<compile_context>
chip_gen: v6e
topology: v6e:2x2x1
jax: 0.10.0
libtpu: 0.0.40
codegen_flags: <defaults>
</compile_context>

<pallas_src>
import functools

import numpy as np
import jax
import jax.numpy as jnp
from jax import lax
from jax.experimental import pallas as pl
from jax.experimental.pallas import tpu as pltpu

HIDDEN = 128          # hidden_dim / edge_features / embedding_dim
NUM_RBF = 16
NUM_POS = 16          # num_positional_embeddings
MAX_REL = 32          # max_relative_feature
NUM_LETTERS = 21      # vocab / num_letters (ignore_unknown=False)
EDGE_IN = NUM_POS + 25 * NUM_RBF   # 416
NUM_CLS = 2 * MAX_REL + 2          # 66 positional classes

# atom indices in the packed 15-wide coordinate vector: N=0, Ca=1, C=2, O=3, Cb=4
# pair order matches the reference RBF_all append order (pairs 1..24; pair 0 is
# the mask-adjusted Ca-Ca distance D_neighbors fed from the wrapper).
_PAIRS = [(0, 0), (2, 2), (3, 3), (4, 4), (1, 0), (1, 2), (1, 3), (1, 4),
          (0, 2), (0, 3), (0, 4), (4, 2), (4, 3), (3, 2), (0, 1), (2, 1),
          (3, 1), (4, 1), (2, 0), (3, 0), (4, 0), (2, 4), (3, 4), (2, 3)]
_NPAIR = len(_PAIRS)              # 24
_NDIST = _NPAIR + 1               # 25
_RBF_W = _NDIST * NUM_RBF         # 400


def _make_constants():
    """Small constant matrices that move the distance/RBF math onto the MXU."""
    selA = np.zeros((15, 3 * _NPAIR), np.float32)   # pick self-atom xyz per pair
    selB = np.zeros((15, 3 * _NPAIR), np.float32)   # pick nbr-atom  xyz per pair
    sum3 = np.zeros((3 * _NPAIR, _NPAIR), np.float32)   # sum xyz -> squared dist
    for p, (a_i, b_i) in enumerate(_PAIRS):
        for j in range(3):
            selA[3 * a_i + j, 3 * p + j] = 1.0
            selB[3 * b_i + j, 3 * p + j] = 1.0
            sum3[3 * p + j, p] = 1.0
    sigma = (22.0 - 2.0) / NUM_RBF                   # 1.25
    mu = np.linspace(2.0, 22.0, NUM_RBF).astype(np.float32)
    e25s = np.zeros((_NDIST, _RBF_W), np.float32)    # expand 25 dists -> 400 cols (/sigma folded)
    negmus = np.zeros((1, _RBF_W), np.float32)       # -mu/sigma, tiled 25x
    for q in range(_NDIST):
        for j in range(NUM_RBF):
            e25s[q, q * NUM_RBF + j] = 1.0 / sigma
            negmus[0, q * NUM_RBF + j] = -mu[j] / sigma
    return (jnp.asarray(selA), jnp.asarray(selB), jnp.asarray(sum3),
            jnp.asarray(e25s), jnp.asarray(negmus))


# ----------------------------------------------------------------------------
# Pallas kernel: one (batch, L-tile) block of edges
# ----------------------------------------------------------------------------
def _edge_kernel(dpos_ref, dnbr_ref, selfc_ref, nbrc_ref,
                 selA_ref, selB_ref, sum3_ref, e25s_ref, negmus_ref,
                 wposf_ref, bfold_ref, wrbf_ref, gamma_ref, beta_ref,
                 we_ref, be_ref, out_ref):
    TL = selfc_ref.shape[0]          # residues in this L-tile
    R, H = out_ref.shape             # R = TL * K edge rows, H = 128
    K = R // TL
    C = selA_ref.shape[1]            # 72 = 3 * 24 pair-aligned coord columns

    # ---- geometry (f32): 24 pair distances, lane-dense ---------------------
    selfc = selfc_ref[...]                                             # (TL, 15)
    selfP_tl = jnp.dot(selfc, selA_ref[...],
                       preferred_element_type=jnp.float32)             # (TL, 72)
    selfP = jnp.broadcast_to(selfP_tl[:, None, :], (TL, K, C)).reshape(R, C)
    nbrP = jnp.dot(nbrc_ref[...], selB_ref[...],
                   preferred_element_type=jnp.float32)                 # (R, 72)
    diff = selfP - nbrP
    d2 = jnp.dot(diff * diff, sum3_ref[...],
                 preferred_element_type=jnp.float32)                   # (R, 24)
    d_pairs = jnp.sqrt(d2 + 1e-6)

    # first distance channel is the mask-adjusted D_neighbors from the wrapper
    d_all = jnp.concatenate([dnbr_ref[...], d_pairs], axis=-1)         # (R, 25)

    # ---- RBF: single (R, 400) exp, lane-dense -------------------------------
    z = jnp.dot(d_all, e25s_ref[...],
                preferred_element_type=jnp.float32) + negmus_ref[...]  # (R, 400)
    rbf = jnp.exp(-(z * z))

    # ---- positional one-hot, folded through edge_embedding ------------------
    d_idx = dpos_ref[...]                                              # (R, 1) int32
    iota = lax.broadcasted_iota(jnp.int32, (R, NUM_CLS), 1)
    onehot = (d_idx == iota).astype(jnp.float32).astype(jnp.bfloat16)  # (R, 66)

    # ---- edge_embedding (no bias): accumulate straight into H=128 -----------
    ee = jnp.dot(onehot, wposf_ref[...], preferred_element_type=jnp.float32)
    ee = ee + jnp.dot(rbf.astype(jnp.bfloat16), wrbf_ref[...],
                      preferred_element_type=jnp.float32)
    ee = ee + bfold_ref[...]                                           # (R, 128) f32

    # ---- LayerNorm (single pass: sum + sum of squares) ----------------------
    s = jnp.sum(ee, axis=-1, keepdims=True)
    ss = jnp.sum(ee * ee, axis=-1, keepdims=True)
    mean = s * (1.0 / H)
    var = ss * (1.0 / H) - mean * mean
    inv = lax.rsqrt(var + 1e-5)
    en = (ee - mean) * inv * gamma_ref[...] + beta_ref[...]

    # ---- W_e -----------------------------------------------------------------
    he = jnp.dot(en.astype(jnp.bfloat16), we_ref[...],
                 preferred_element_type=jnp.float32) + be_ref[...]
    out_ref[...] = he.astype(out_ref.dtype)


def _choose_tl(L, K, target_rows=1024):
    """Pick an L-tile so TL*K edge rows keep the working set well under VMEM."""
    if L * K <= target_rows:
        return L
    return min(L, max(8, ((target_rows // K) // 8) * 8))


def _edge_feature_call(params, d_pos, D_neighbors, atoms, nbr_atoms,
                       out_dtype=jnp.bfloat16):
    B, L, K = D_neighbors.shape
    H = HIDDEN
    TL = _choose_tl(L, K)
    TLK = TL * K
    n_lt = (L + TL - 1) // TL

    selA, selB, sum3, e25s, negmus = _make_constants()

    # fold positional linear through edge_embedding (wrapper-side, tiny)
    w_e16 = params['W_edge'][:NUM_POS]                                   # (16, 128)
    w_posfold = (params['W_pos'] @ w_e16).astype(jnp.bfloat16)           # (66, 128)
    b_fold = (params['b_pos'] @ w_e16).astype(jnp.float32)               # (1, 128)
    w_rbf = params['W_edge'][NUM_POS:].astype(jnp.bfloat16)              # (400, 128)
    w_e = params['W_e'].astype(jnp.bfloat16)                             # (128, 128)

    # flat edge-row layout (free bitcast reshapes)
    d_pos_f = d_pos.reshape(B, L * K, 1).astype(jnp.int32)
    dn_f = D_neighbors.reshape(B, L * K, 1).astype(jnp.float32)
    nbr_f = nbr_atoms.reshape(B, L * K, 15).astype(jnp.float32)
    atoms_f = atoms.astype(jnp.float32)

    row_map = lambda b, lt: (b, lt, 0)
    res_map = lambda b, lt: (b, lt, 0)
    w_map = lambda b, lt: (0, 0)

    in_specs = [
        pl.BlockSpec((None, TLK, 1), row_map),        # d_pos (positional class id)
        pl.BlockSpec((None, TLK, 1), row_map),        # D_neighbors (mask-adjusted)
        pl.BlockSpec((None, TL, 15), res_map),        # self atoms (N,Ca,C,O,Cb)
        pl.BlockSpec((None, TLK, 15), row_map),       # gathered neighbor atoms
        pl.BlockSpec(selA.shape, w_map),
        pl.BlockSpec(selB.shape, w_map),
        pl.BlockSpec(sum3.shape, w_map),
        pl.BlockSpec(e25s.shape, w_map),
        pl.BlockSpec(negmus.shape, w_map),
        pl.BlockSpec(w_posfold.shape, w_map),
        pl.BlockSpec(b_fold.shape, w_map),
        pl.BlockSpec(w_rbf.shape, w_map),
        pl.BlockSpec(params['ln_gamma'].shape, w_map),
        pl.BlockSpec(params['ln_beta'].shape, w_map),
        pl.BlockSpec(w_e.shape, w_map),
        pl.BlockSpec(params['b_e'].shape, w_map),
    ]
    out_spec = pl.BlockSpec((None, TLK, H), row_map)

    h_e_flat = pl.pallas_call(
        _edge_kernel,
        out_shape=jax.ShapeDtypeStruct((B, L * K, H), out_dtype),
        grid=(B, n_lt),
        in_specs=in_specs,
        out_specs=out_spec,
        compiler_params=pltpu.CompilerParams(
            dimension_semantics=("parallel", "parallel"),
            vmem_limit_bytes=32 * 1024 * 1024),
    )(d_pos_f, dn_f, atoms_f, nbr_f, selA, selB, sum3, e25s, negmus,
      w_posfold, b_fold, w_rbf, params['ln_gamma'], params['ln_beta'],
      w_e, params['b_e'])
    return h_e_flat.reshape(B, L, K, H)


# ----------------------------------------------------------------------------
# ProteinFeatures glue (pairwise dist / top-k / gathers), kernel does the rest
# ----------------------------------------------------------------------------
def _protein_features(params, X, mask, residue_idx, chain_labels, k_neighbors):
    B, L = X.shape[0], X.shape[1]
    N = X[:, :, 0, :]
    Ca = X[:, :, 1, :]
    C = X[:, :, 2, :]
    O = X[:, :, 3, :]
    b = Ca - N
    c = C - Ca
    a = jnp.cross(b, c)
    Cb = -0.58273431 * a + 0.56802827 * b - 0.54067466 * c + Ca

    # _dist on Ca (mask-adjusted) + top-k smallest
    mask2d = mask[:, None, :] * mask[:, :, None]
    dX = Ca[:, None, :, :] - Ca[:, :, None, :]
    D = mask2d * jnp.sqrt(jnp.sum(dX * dX, -1) + 1e-6)
    D_max = jnp.max(D, -1, keepdims=True)
    D_adjust = D + (1.0 - mask2d) * D_max
    k = min(k_neighbors, L)
    neg_vals, E_idx = lax.top_k(-D_adjust, k)     # k smallest distances
    D_neighbors = -neg_vals                       # (B, L, K)

    atoms = jnp.concatenate([N, Ca, C, O, Cb], axis=-1)          # (B, L, 15)
    b_idx = jnp.arange(B)[:, None, None]
    nbr_atoms = atoms[b_idx, E_idx]                              # (B, L, K, 15)
    offset = residue_idx[:, :, None] - residue_idx[b_idx, E_idx]  # (B, L, K)
    e_chains = (chain_labels[:, :, None] ==
                chain_labels[b_idx, E_idx]).astype(jnp.int32)
    # positional class id (same math as PositionalEncodings.forward)
    d_pos = (jnp.clip(offset + MAX_REL, 0, 2 * MAX_REL) * e_chains
             + (1 - e_chains) * (2 * MAX_REL + 1))

    h_E = _edge_feature_call(params, d_pos, D_neighbors, atoms, nbr_atoms)
    return h_E, E_idx


# ----------------------------------------------------------------------------
# ProteinMPNN forward (encoder_type='mpnn', decoder_type='mpnn', defaults)
# ----------------------------------------------------------------------------
def protein_mpnn_forward(params, X, S, mask, mask_original, chain_M,
                         residue_idx, chain_encoding_all, k_neighbors=8, n_cycles=1):
    output = []
    seq = S
    coords = X
    for cycle in range(n_cycles):
        if cycle == 0:
            seq = jnp.where(chain_M > 0.5, 0, seq)           # initialize_sequence
            # noise_coords: eval mode (training=False) -> no-op

        # h_S = W_s(seq)  (kept for fidelity; add_sequence_in_decoder=False for
        # the one-shot mpnn configuration so it is unused downstream here)
        h_S = params['W_s'][seq]                              # (B, L, 128)

        # generate_embeddings: edge features + W_e fused in the Pallas kernel
        h_E, E_idx = _protein_features(params, coords[:, :, :4], mask,
                                       residue_idx, chain_encoding_all, k_neighbors)
        B, L = seq.shape
        h_V = jnp.zeros((B, L, HIDDEN), jnp.float32)          # str_features=False

        # TODO(synk): MPNN_Encoder / MPNN_Decoder_OS class definitions were not
        # provided with the module; encoder and decoder are identity passthroughs.

        logits = jnp.einsum('bld,dv->blv', h_V, params['W_out']) + params['b_out']
        new_seq = jnp.argmax(logits, axis=-1).astype(seq.dtype)
        seq = jnp.where(chain_M > 0.5, new_seq, seq)          # num_letters == 21 -> no +1
        output.append({'seq': logits, 'h_E': h_E, 'E_idx': E_idx, 'h_S': h_S})
    return output


# ----------------------------------------------------------------------------
# Deterministic synthetic parameter init (xavier-uniform for dim>1, zeros/ones else)
# ----------------------------------------------------------------------------
def init_params(key):
    ks = jax.random.split(key, 6)

    def xavier(k, shape):
        limit = (6.0 / (shape[0] + shape[1])) ** 0.5
        return jax.random.uniform(k, shape, jnp.float32, -limit, limit)

    return {
        'W_pos': xavier(ks[0], (NUM_CLS, NUM_POS)),           # PositionalEncodings.linear (66->16)
        'b_pos': jnp.zeros((1, NUM_POS), jnp.float32),
        'W_edge': xavier(ks[1], (EDGE_IN, HIDDEN)),           # edge_embedding (416->128, no bias)
        'ln_gamma': jnp.ones((1, HIDDEN), jnp.float32),       # norm_edges
        'ln_beta': jnp.zeros((1, HIDDEN), jnp.float32),
        'W_e': xavier(ks[2], (HIDDEN, HIDDEN)),               # W_e
        'b_e': jnp.zeros((1, HIDDEN), jnp.float32),
        'W_s': xavier(ks[3], (NUM_LETTERS, HIDDEN)),          # W_s embedding (21, 128)
        'W_out': xavier(ks[4], (HIDDEN, NUM_LETTERS)),        # W_out (128->21)
        'b_out': jnp.zeros((NUM_LETTERS,), jnp.float32),
    }


if __name__ == "__main__":
    key = jax.random.PRNGKey(0)
    k0, k1, k2, k3 = jax.random.split(key, 4)

    B, L, K_NEIGHBORS = 2, 16, 8

    params = init_params(k0)

    X = 3.0 * jax.random.normal(k1, (B, L, 4, 3), jnp.float32)
    S = jax.random.randint(k2, (B, L), 0, NUM_LETTERS, dtype=jnp.int32)
    mask = jnp.ones((B, L), jnp.float32).at[1, L - 1].set(0.0)
    mask_original = mask
    chain_M = (jax.random.uniform(k3, (B, L)) > 0.5).astype(jnp.float32)
    half = L // 2
    residue_idx = jnp.concatenate(
        [jnp.arange(half, dtype=jnp.int32), jnp.arange(half, dtype=jnp.int32) + 100]
    )[None, :].repeat(B, axis=0)
    chain_encoding_all = jnp.concatenate(
        [jnp.zeros((half,), jnp.int32), jnp.ones((half,), jnp.int32)]
    )[None, :].repeat(B, axis=0)

    fwd = jax.jit(protein_mpnn_forward, static_argnames=("k_neighbors", "n_cycles"))
    out = fwd(params, X, S, mask, mask_original, chain_M,
              residue_idx, chain_encoding_all,
              k_neighbors=K_NEIGHBORS, n_cycles=1)
    jax.block_until_ready(out[0]['seq'])
    jax.block_until_ready(out[0]['h_E'])
    print("KERNEL_OK")
</pallas_src>

<mosaic_0001>
module attributes {stable_mosaic.version = 11 : i64} {
  func.func @_edge_kernel(%arg0: i32, %arg1: i32, %arg2: memref<1x128x1xi32, #tpu.memory_space<vmem>>, %arg3: memref<1x128x1xf32, #tpu.memory_space<vmem>>, %arg4: memref<1x16x15xf32, #tpu.memory_space<vmem>>, %arg5: memref<1x128x15xf32, #tpu.memory_space<vmem>>, %arg6: memref<15x72xf32, #tpu.memory_space<vmem>>, %arg7: memref<15x72xf32, #tpu.memory_space<vmem>>, %arg8: memref<72x24xf32, #tpu.memory_space<vmem>>, %arg9: memref<25x400xf32, #tpu.memory_space<vmem>>, %arg10: memref<1x400xf32, #tpu.memory_space<vmem>>, %arg11: memref<66x128xbf16, #tpu.memory_space<vmem>>, %arg12: memref<1x128xf32, #tpu.memory_space<vmem>>, %arg13: memref<400x128xbf16, #tpu.memory_space<vmem>>, %arg14: memref<1x128xf32, #tpu.memory_space<vmem>>, %arg15: memref<1x128xf32, #tpu.memory_space<vmem>>, %arg16: memref<128x128xbf16, #tpu.memory_space<vmem>>, %arg17: memref<1x128xf32, #tpu.memory_space<vmem>>, %arg18: memref<1x128x128xbf16, #tpu.memory_space<vmem>>) attributes {dimension_semantics = [#tpu.dimension_semantics<parallel>, #tpu.dimension_semantics<parallel>], iteration_bounds = array<i64: 2, 1>, scalar_prefetch = 0 : i64, scratch_operands = 0 : i64, tpu.core_type = #tpu.core_type<tc>, window_params = [{transform_indices = @transform_0, window_bounds = array<i64: 1, 128, 1>}, {transform_indices = @transform_1, window_bounds = array<i64: 1, 128, 1>}, {transform_indices = @transform_2, window_bounds = array<i64: 1, 16, 15>}, {transform_indices = @transform_3, window_bounds = array<i64: 1, 128, 15>}, {pipeline_mode = #tpu.pipeline_mode<synchronous>, transform_indices = @transform_4, window_bounds = array<i64: 15, 72>}, {pipeline_mode = #tpu.pipeline_mode<synchronous>, transform_indices = @transform_5, window_bounds = array<i64: 15, 72>}, {pipeline_mode = #tpu.pipeline_mode<synchronous>, transform_indices = @transform_6, window_bounds = array<i64: 72, 24>}, {pipeline_mode = #tpu.pipeline_mode<synchronous>, transform_indices = @transform_7, window_bounds = array<i64: 25, 400>}, {pipeline_mode = #tpu.pipeline_mode<synchronous>, transform_indices = @transform_8, window_bounds = array<i64: 1, 400>}, {pipeline_mode = #tpu.pipeline_mode<synchronous>, transform_indices = @transform_9, window_bounds = array<i64: 66, 128>}, {pipeline_mode = #tpu.pipeline_mode<synchronous>, transform_indices = @transform_10, window_bounds = array<i64: 1, 128>}, {pipeline_mode = #tpu.pipeline_mode<synchronous>, transform_indices = @transform_11, window_bounds = array<i64: 400, 128>}, {pipeline_mode = #tpu.pipeline_mode<synchronous>, transform_indices = @transform_12, window_bounds = array<i64: 1, 128>}, {pipeline_mode = #tpu.pipeline_mode<synchronous>, transform_indices = @transform_13, window_bounds = array<i64: 1, 128>}, {pipeline_mode = #tpu.pipeline_mode<synchronous>, transform_indices = @transform_14, window_bounds = array<i64: 128, 128>}, {pipeline_mode = #tpu.pipeline_mode<synchronous>, transform_indices = @transform_15, window_bounds = array<i64: 1, 128>}, {transform_indices = @transform_16, window_bounds = array<i64: 1, 128, 128>}]} {
    %c0 = arith.constant 0 : index
    %c0_0 = arith.constant 0 : index
    %c0_1 = arith.constant 0 : index
    %0 = vector.load %arg4[%c0, %c0_0, %c0_1] : memref<1x16x15xf32, #tpu.memory_space<vmem>>, vector<1x16x15xf32>
    %1 = vector.shape_cast %0 : vector<1x16x15xf32> to vector<16x15xf32>
    %c0_2 = arith.constant 0 : index
    %c0_3 = arith.constant 0 : index
    %2 = vector.load %arg6[%c0_2, %c0_3] : memref<15x72xf32, #tpu.memory_space<vmem>>, vector<15x72xf32>
    %cst = arith.constant dense<0.000000e+00> : vector<16x72xf32>
    %3 = tpu.matmul %1, %2, %cst {dimension_numbers = #tpu.dot_dimension_numbers<[1], [0], [0], [1], [0, 0, 1, 1], [], []>} : vector<16x15xf32>, vector<15x72xf32>, vector<16x72xf32> -> vector<16x72xf32>
    %4 = vector.shape_cast %3 : vector<16x72xf32> to vector<16x1x72xf32>
    %5 = vector.shape_cast %4 : vector<16x1x72xf32> to vector<16x1x72xf32>
    %6 = vector.broadcast %5 : vector<16x1x72xf32> to vector<16x8x72xf32>
    %7 = vector.shape_cast %6 : vector<16x8x72xf32> to vector<128x72xf32>
    %c0_4 = arith.constant 0 : index
    %c0_5 = arith.constant 0 : index
    %c0_6 = arith.constant 0 : index
    %8 = vector.load %arg5[%c0_4, %c0_5, %c0_6] : memref<1x128x15xf32, #tpu.memory_space<vmem>>, vector<1x128x15xf32>
    %9 = vector.shape_cast %8 : vector<1x128x15xf32> to vector<128x15xf32>
    %c0_7 = arith.constant 0 : index
    %c0_8 = arith.constant 0 : index
    %10 = vector.load %arg7[%c0_7, %c0_8] : memref<15x72xf32, #tpu.memory_space<vmem>>, vector<15x72xf32>
    %cst_9 = arith.constant dense<0.000000e+00> : vector<128x72xf32>
    %11 = tpu.matmul %9, %10, %cst_9 {dimension_numbers = #tpu.dot_dimension_numbers<[1], [0], [0], [1], [0, 0, 1, 1], [], []>} : vector<128x15xf32>, vector<15x72xf32>, vector<128x72xf32> -> vector<128x72xf32>
    %12 = arith.subf %7, %11 : vector<128x72xf32>
    %13 = arith.mulf %12, %12 : vector<128x72xf32>
    %c0_10 = arith.constant 0 : index
    %c0_11 = arith.constant 0 : index
    %14 = vector.load %arg8[%c0_10, %c0_11] : memref<72x24xf32, #tpu.memory_space<vmem>>, vector<72x24xf32>
    %cst_12 = arith.constant dense<0.000000e+00> : vector<128x24xf32>
    %15 = tpu.matmul %13, %14, %cst_12 {dimension_numbers = #tpu.dot_dimension_numbers<[1], [0], [0], [1], [0, 0, 1, 1], [], []>} : vector<128x72xf32>, vector<72x24xf32>, vector<128x24xf32> -> vector<128x24xf32>
    %cst_13 = arith.constant 9.99999997E-7 : f32
    %16 = vector.broadcast %cst_13 : f32 to vector<128x24xf32>
    %17 = arith.addf %15, %16 : vector<128x24xf32>
    %18 = math.sqrt %17 : vector<128x24xf32>
    %c0_14 = arith.constant 0 : index
    %c0_15 = arith.constant 0 : index
    %c0_16 = arith.constant 0 : index
    %19 = vector.load %arg3[%c0_14, %c0_15, %c0_16] : memref<1x128x1xf32, #tpu.memory_space<vmem>>, vector<1x128x1xf32>
    %20 = vector.shape_cast %19 : vector<1x128x1xf32> to vector<128x1xf32>
    %21 = tpu.concatenate %20, %18 in 1 : vector<128x1xf32>, vector<128x24xf32> -> vector<128x25xf32>
    %c0_17 = arith.constant 0 : index
    %c0_18 = arith.constant 0 : index
    %22 = vector.load %arg9[%c0_17, %c0_18] : memref<25x400xf32, #tpu.memory_space<vmem>>, vector<25x400xf32>
    %cst_19 = arith.constant dense<0.000000e+00> : vector<128x400xf32>
    %23 = tpu.matmul %21, %22, %cst_19 {dimension_numbers = #tpu.dot_dimension_numbers<[1], [0], [0], [1], [0, 0, 1, 1], [], []>} : vector<128x25xf32>, vector<25x400xf32>, vector<128x400xf32> -> vector<128x400xf32>
    %c0_20 = arith.constant 0 : index
    %c0_21 = arith.constant 0 : index
    %24 = vector.load %arg10[%c0_20, %c0_21] : memref<1x400xf32, #tpu.memory_space<vmem>>, vector<1x400xf32>
    %25 = vector.broadcast %24 : vector<1x400xf32> to vector<128x400xf32>
    %26 = arith.addf %23, %25 : vector<128x400xf32>
    %27 = arith.mulf %26, %26 : vector<128x400xf32>
    %cst_22 = arith.constant 0.000000e+00 : f32
    %28 = vector.broadcast %cst_22 : f32 to vector<128x400xf32>
    %29 = arith.subf %28, %27 : vector<128x400xf32>
    %30 = math.exp %29 : vector<128x400xf32>
    %c0_23 = arith.constant 0 : index
    %c0_24 = arith.constant 0 : index
    %c0_25 = arith.constant 0 : index
    %31 = vector.load %arg2[%c0_23, %c0_24, %c0_25] : memref<1x128x1xi32, #tpu.memory_space<vmem>>, vector<1x128x1xi32>
    %32 = vector.shape_cast %31 : vector<1x128x1xi32> to vector<128x1xi32>
    %33 = tpu.iota {dimensions = array<i32: 1>} : vector<128x66xi32>
    %34 = vector.broadcast %32 : vector<128x1xi32> to vector<128x66xi32>
    %35 = arith.cmpi eq, %34, %33 : vector<128x66xi32>
    %36 = arith.extui %35 : vector<128x66xi1> to vector<128x66xi32>
    %37 = arith.sitofp %36 : vector<128x66xi32> to vector<128x66xf32>
    %38 = arith.truncf %37 : vector<128x66xf32> to vector<128x66xbf16>
    %c0_26 = arith.constant 0 : index
    %c0_27 = arith.constant 0 : index
    %39 = vector.load %arg11[%c0_26, %c0_27] : memref<66x128xbf16, #tpu.memory_space<vmem>>, vector<66x128xbf16>
    %cst_28 = arith.constant dense<0.000000e+00> : vector<128x128xf32>
    %40 = tpu.matmul %38, %39, %cst_28 {dimension_numbers = #tpu.dot_dimension_numbers<[1], [0], [0], [1], [0, 0, 1, 1], [], []>} : vector<128x66xbf16>, vector<66x128xbf16>, vector<128x128xf32> -> vector<128x128xf32>
    %41 = arith.truncf %30 : vector<128x400xf32> to vector<128x400xbf16>
    %c0_29 = arith.constant 0 : index
    %c0_30 = arith.constant 0 : index
    %42 = vector.load %arg13[%c0_29, %c0_30] : memref<400x128xbf16, #tpu.memory_space<vmem>>, vector<400x128xbf16>
    %cst_31 = arith.constant dense<0.000000e+00> : vector<128x128xf32>
    %43 = tpu.matmul %41, %42, %cst_31 {dimension_numbers = #tpu.dot_dimension_numbers<[1], [0], [0], [1], [0, 0, 1, 1], [], []>} : vector<128x400xbf16>, vector<400x128xbf16>, vector<128x128xf32> -> vector<128x128xf32>
    %44 = arith.addf %40, %43 : vector<128x128xf32>
    %c0_32 = arith.constant 0 : index
    %c0_33 = arith.constant 0 : index
    %45 = vector.load %arg12[%c0_32, %c0_33] : memref<1x128xf32, #tpu.memory_space<vmem>>, vector<1x128xf32>
    %46 = vector.broadcast %45 : vector<1x128xf32> to vector<128x128xf32>
    %47 = arith.addf %44, %46 : vector<128x128xf32>
    %cst_34 = arith.constant dense<0.000000e+00> : vector<128xf32>
    %48 = vector.multi_reduction <add>, %47, %cst_34 [1] : vector<128x128xf32> to vector<128xf32>
    %49 = vector.shape_cast %48 : vector<128xf32> to vector<128x1xf32>
    %50 = arith.mulf %47, %47 : vector<128x128xf32>
    %cst_35 = arith.constant dense<0.000000e+00> : vector<128xf32>
    %51 = vector.multi_reduction <add>, %50, %cst_35 [1] : vector<128x128xf32> to vector<128xf32>
    %52 = vector.shape_cast %51 : vector<128xf32> to vector<128x1xf32>
    %cst_36 = arith.constant 7.812500e-03 : f32
    %53 = vector.broadcast %cst_36 : f32 to vector<128x1xf32>
    %54 = arith.mulf %49, %53 : vector<128x1xf32>
    %cst_37 = arith.constant 7.812500e-03 : f32
    %55 = vector.broadcast %cst_37 : f32 to vector<128x1xf32>
    %56 = arith.mulf %52, %55 : vector<128x1xf32>
    %57 = arith.mulf %54, %54 : vector<128x1xf32>
    %58 = arith.subf %56, %57 : vector<128x1xf32>
    %cst_38 = arith.constant 9.99999974E-6 : f32
    %59 = vector.broadcast %cst_38 : f32 to vector<128x1xf32>
    %60 = arith.addf %58, %59 : vector<128x1xf32>
    %61 = math.rsqrt %60 : vector<128x1xf32>
    %62 = vector.broadcast %54 : vector<128x1xf32> to vector<128x128xf32>
    %63 = arith.subf %47, %62 : vector<128x128xf32>
    %64 = vector.broadcast %61 : vector<128x1xf32> to vector<128x128xf32>
    %65 = arith.mulf %63, %64 : vector<128x128xf32>
    %c0_39 = arith.constant 0 : index
    %c0_40 = arith.constant 0 : index
    %66 = vector.load %arg14[%c0_39, %c0_40] : memref<1x128xf32, #tpu.memory_space<vmem>>, vector<1x128xf32>
    %67 = vector.broadcast %66 : vector<1x128xf32> to vector<128x128xf32>
    %68 = arith.mulf %65, %67 : vector<128x128xf32>
    %c0_41 = arith.constant 0 : index
    %c0_42 = arith.constant 0 : index
    %69 = vector.load %arg15[%c0_41, %c0_42] : memref<1x128xf32, #tpu.memory_space<vmem>>, vector<1x128xf32>
    %70 = vector.broadcast %69 : vector<1x128xf32> to vector<128x128xf32>
    %71 = arith.addf %68, %70 : vector<128x128xf32>
    %72 = arith.truncf %71 : vector<128x128xf32> to vector<128x128xbf16>
    %c0_43 = arith.constant 0 : index
    %c0_44 = arith.constant 0 : index
    %73 = vector.load %arg16[%c0_43, %c0_44] : memref<128x128xbf16, #tpu.memory_space<vmem>>, vector<128x128xbf16>
    %cst_45 = arith.constant dense<0.000000e+00> : vector<128x128xf32>
    %74 = tpu.matmul %72, %73, %cst_45 {dimension_numbers = #tpu.dot_dimension_numbers<[1], [0], [0], [1], [0, 0, 1, 1], [], []>} : vector<128x128xbf16>, vector<128x128xbf16>, vector<128x128xf32> -> vector<128x128xf32>
    %c0_46 = arith.constant 0 : index
    %c0_47 = arith.constant 0 : index
    %75 = vector.load %arg17[%c0_46, %c0_47] : memref<1x128xf32, #tpu.memory_space<vmem>>, vector<1x128xf32>
    %76 = vector.broadcast %75 : vector<1x128xf32> to vector<128x128xf32>
    %77 = arith.addf %74, %76 : vector<128x128xf32>
    %78 = arith.truncf %77 : vector<128x128xf32> to vector<128x128xbf16>
    %c0_48 = arith.constant 0 : index
    %c0_49 = arith.constant 0 : index
    %c0_50 = arith.constant 0 : index
    %79 = vector.load %arg18[%c0_48, %c0_49, %c0_50] : memref<1x128x128xbf16, #tpu.memory_space<vmem>>, vector<1x128x128xbf16>
    %80 = vector.shape_cast %79 : vector<1x128x128xbf16> to vector<128x128xbf16>
    %81 = vector.shape_cast %78 : vector<128x128xbf16> to vector<1x128x128xbf16>
    tpu.vector_store %arg18[%c0_48, %c0_49, %c0_50], %81 {strides = array<i32>} : memref<1x128x128xbf16, #tpu.memory_space<vmem>>, vector<1x128x128xbf16>,
    return
  }
  func.func @transform_0(%arg0: i32, %arg1: i32) -> (i32, i32, i32) {
    %c0_i32 = arith.constant 0 : i32
    %c0_i32_0 = arith.constant 0 : i32
    return %arg0, %arg1, %c0_i32 : i32, i32, i32
  }
  func.func @transform_1(%arg0: i32, %arg1: i32) -> (i32, i32, i32) {
    %c0_i32 = arith.constant 0 : i32
    %c0_i32_0 = arith.constant 0 : i32
    return %arg0, %arg1, %c0_i32 : i32, i32, i32
  }
  func.func @transform_2(%arg0: i32, %arg1: i32) -> (i32, i32, i32) {
    %c0_i32 = arith.constant 0 : i32
    %c0_i32_0 = arith.constant 0 : i32
    return %arg0, %arg1, %c0_i32 : i32, i32, i32
  }
  func.func @transform_3(%arg0: i32, %arg1: i32) -> (i32, i32, i32) {
    %c0_i32 = arith.constant 0 : i32
    %c0_i32_0 = arith.constant 0 : i32
    return %arg0, %arg1, %c0_i32 : i32, i32, i32
  }
  func.func @transform_4(%arg0: i32, %arg1: i32) -> (i32, i32) {
    %c0_i32 = arith.constant 0 : i32
    %c0_i32_0 = arith.constant 0 : i32
    %c0_i32_1 = arith.constant 0 : i32
    return %c0_i32, %c0_i32_0 : i32, i32
  }
  func.func @transform_5(%arg0: i32, %arg1: i32) -> (i32, i32) {
    %c0_i32 = arith.constant 0 : i32
    %c0_i32_0 = arith.constant 0 : i32
    %c0_i32_1 = arith.constant 0 : i32
    return %c0_i32, %c0_i32_0 : i32, i32
  }
  func.func @transform_6(%arg0: i32, %arg1: i32) -> (i32, i32) {
    %c0_i32 = arith.constant 0 : i32
    %c0_i32_0 = arith.constant 0 : i32
    %c0_i32_1 = arith.constant 0 : i32
    return %c0_i32, %c0_i32_0 : i32, i32
  }
  func.func @transform_7(%arg0: i32, %arg1: i32) -> (i32, i32) {
    %c0_i32 = arith.constant 0 : i32
    %c0_i32_0 = arith.constant 0 : i32
    %c0_i32_1 = arith.constant 0 : i32
    return %c0_i32, %c0_i32_0 : i32, i32
  }
  func.func @transform_8(%arg0: i32, %arg1: i32) -> (i32, i32) {
    %c0_i32 = arith.constant 0 : i32
    %c0_i32_0 = arith.constant 0 : i32
    %c0_i32_1 = arith.constant 0 : i32
    return %c0_i32, %c0_i32_0 : i32, i32
  }
  func.func @transform_9(%arg0: i32, %arg1: i32) -> (i32, i32) {
    %c0_i32 = arith.constant 0 : i32
    %c0_i32_0 = arith.constant 0 : i32
    %c0_i32_1 = arith.constant 0 : i32
    return %c0_i32, %c0_i32_0 : i32, i32
  }
  func.func @transform_10(%arg0: i32, %arg1: i32) -> (i32, i32) {
    %c0_i32 = arith.constant 0 : i32
    %c0_i32_0 = arith.constant 0 : i32
    %c0_i32_1 = arith.constant 0 : i32
    return %c0_i32, %c0_i32_0 : i32, i32
  }
  func.func @transform_11(%arg0: i32, %arg1: i32) -> (i32, i32) {
    %c0_i32 = arith.constant 0 : i32
    %c0_i32_0 = arith.constant 0 : i32
    %c0_i32_1 = arith.constant 0 : i32
    return %c0_i32, %c0_i32_0 : i32, i32
  }
  func.func @transform_12(%arg0: i32, %arg1: i32) -> (i32, i32) {
    %c0_i32 = arith.constant 0 : i32
    %c0_i32_0 = arith.constant 0 : i32
    %c0_i32_1 = arith.constant 0 : i32
    return %c0_i32, %c0_i32_0 : i32, i32
  }
  func.func @transform_13(%arg0: i32, %arg1: i32) -> (i32, i32) {
    %c0_i32 = arith.constant 0 : i32
    %c0_i32_0 = arith.constant 0 : i32
    %c0_i32_1 = arith.constant 0 : i32
    return %c0_i32, %c0_i32_0 : i32, i32
  }
  func.func @transform_14(%arg0: i32, %arg1: i32) -> (i32, i32) {
    %c0_i32 = arith.constant 0 : i32
    %c0_i32_0 = arith.constant 0 : i32
    %c0_i32_1 = arith.constant 0 : i32
    return %c0_i32, %c0_i32_0 : i32, i32
  }
  func.func @transform_15(%arg0: i32, %arg1: i32) -> (i32, i32) {
    %c0_i32 = arith.constant 0 : i32
    %c0_i32_0 = arith.constant 0 : i32
    %c0_i32_1 = arith.constant 0 : i32
    return %c0_i32, %c0_i32_0 : i32, i32
  }
  func.func @transform_16(%arg0: i32, %arg1: i32) -> (i32, i32, i32) {
    %c0_i32 = arith.constant 0 : i32
    %c0_i32_0 = arith.constant 0 : i32
    return %arg0, %arg1, %c0_i32 : i32, i32, i32
  }
}

</mosaic_0001>

<bundles_post_ra>
// kernel: protein_mpnn_forward.1
= control target key start
LH: loop header
LB: loop body
LE: loop exit
PB: predicated region body
PF: predicated region fallthrough
CT: control target
= control target key end

     0   :  { %s6025_s0 = inlined_call_operand.vmem [shape: s32[2,128,1], index: 0, kind: input, shape index: {}]   ;;  %s6026_s1 = inlined_call_operand.vmem [shape: f32[2,128,1], index: 1, kind: input, shape index: {}]   ;;  %s6027_s2 = inlined_call_operand.vmem [shape: f32[2,16,15], index: 2, kind: input, shape index: {}]   ;;  %s6028_s3 = inlined_call_operand.vmem [shape: f32[2,128,15], index: 3, kind: input, shape index: {}]   ;;  %s6029_s4 = inlined_call_operand.vmem [shape: f32[15,72], index: 4, kind: input, shape index: {}]   ;;  %s6030_s5 = inlined_call_operand.vmem [shape: f32[15,72], index: 5, kind: input, shape index: {}]   ;;  %s6031_s6 = inlined_call_operand.vmem [shape: f32[72,24], index: 6, kind: input, shape index: {}]   ;;  %s6032_s7 = inlined_call_operand.vmem [shape: f32[25,400], index: 7, kind: input, shape index: {}]   ;;  %s6033_s8 = inlined_call_operand.vmem [shape: f32[1,400], index: 8, kind: input, shape index: {}]   ;;  %s6034_s9 = inlined_call_operand.vmem [shape: bf16[66,128], index: 9, kind: input, shape index: {}]   ;;  %s6035_s10 = inlined_call_operand.vmem [shape: f32[1,128], index: 10, kind: input, shape index: {}]   ;;  %s6036_s11 = inlined_call_operand.vmem [shape: bf16[400,128], index: 11, kind: input, shape index: {}]   ;;  %s6037_s12 = inlined_call_operand.vmem [shape: f32[1,128], index: 12, kind: input, shape index: {}]   ;;  %s6038_s13 = inlined_call_operand.vmem [shape: f32[1,128], index: 13, kind: input, shape index: {}]   ;;  %s6039_s14 = inlined_call_operand.vmem [shape: bf16[128,128], index: 14, kind: input, shape index: {}]   ;;  %s6040_s15 = inlined_call_operand.vmem [shape: f32[1,128], index: 15, kind: input, shape index: {}]   ;;  %s6041_s16 = inlined_call_operand.hbm [shape: bf16[2,128,128], index: 16, kind: output, shape index: {}]  }
   0x1   :  { %6044 = sst [smem:[#allocation8_spill]] %s6025_s0 }
   0x2   :  { %6045 = sst [smem:[#allocation9_spill]] %s6027_s2 }
   0x3   :  { %6046 = sst [smem:[#allocation10_spill]] %s6028_s3 }
   0x4   :  { %6047 = sst [smem:[#allocation11_spill]] %s6029_s4 }
   0x5   :  { %21 = vsyncpa [#allocation3], 0 }
   0x6   :  { %23 = vsyncpa [#allocation3 + $0x1], 0  ;;  %s4688_s21 = smov 0   ;;  %s4690_s22 = smov 0  }
   0x7   :  { %s4692_s23 = smov 0   ;;  %s4694_s24 = smov 0  }
   0x8   :  { %s4696_s25 = smov 0   ;;  %s4698_s26 = smov 0  }
   0x9 LB: > { %6048 = sst [smem:[#allocation5_spill]] %s4590_s25  ;;  %s3682_s27 = sadd.s32 4294967295, %s4594_s26   ;;  %s4594_s26 = sphi %s4698_s26, %s29_s26   ;;  %s4590_s25 = sphi %s4696_s25, %s6059_s25   ;;  %s4586_s24 = sphi %s4694_s24, %s6058_s24   ;;  %s4582_s23 = sphi %s4692_s23, %s6062_s23   ;;  %s4578_s22 = sphi %s4690_s22, %s6061_s22   ;;  %s4574_s21 = sphi %s4688_s21, %s6060_s21  }
   0xa   : > { %s3683_s28 = sadd.s32 4294967294, %s4594_s26   ;;  %s41_s29 = sadd.s32 1, %s4590_s25 }
   0xb   : > { %s414_s30 = sadd.s32 1, %s4582_s23  ;;  %p43_p0 = scmp.ge.s32.totalorder %s41_s29, 2 }
   0xc   : > { %p424_p1 = scmp.ne.s32.totalorder %s4582_s23, %s4578_s22  ;;  %p425_p2 = scmp.eq.s32.totalorder %s3682_s27, 1 }
   0xd   : > { %p430_p3 = scmp.ne.s32.totalorder %s4578_s22, %s4574_s21  ;;  %s6064_s29 = smov (%p43_p0, %s41_s29), 0 }
   0xe   : > { %6049 = sst [smem:[#allocation6_spill]] %s6064_s29  ;;  %p4728_p4 = por %p425_p2, %p424_p1 }
   0xf   : > { %p431_p5 = scmp.eq.s32.totalorder %s3683_s28, 1  ;;  %s409_s17 = ssub.s32 %s4590_s25, %s6064_s29 }
  0x10   : > { %p3686_p6 = scmp.ge.s32.totalorder %s4594_s26, 1  ;;  %p412_p7 = scmp.eq.s32.totalorder %s409_s17, 0 }
  0x11   : > { %p4735_p8 = por %p431_p5, %p430_p3  ;;  %p537_p9 = scmp.lt.s32.totalorder %s4594_s26, 3 }
  0x12   : > { %s4741_s19 = scalar_select %p412_p7, %s4582_s23, %s414_s30  }
  0x13   : > { %p538_p10 = pnand %p3686_p6, %p537_p9 }
  0x14   : > { %6052 = sst [smem:[#allocation7_spill]] %s4741_s19  ;;  %p619_p11 = scmp.lt.s32.totalorder (!%p538_p10), %s4586_s24, 1 }
  0x15   : > { %541 = sbr.rel (%p538_p10) target bundleno = 1523 (0x5f3), region = 84  ;;  %s6053_s4 = sld [smem:[#allocation11_spill]] (!%p538_p10) }
  0x16   : > { %s6054_s2 = sld [smem:[#allocation9_spill]] (!%p538_p10)  ;;  %s4598_s19 = smov (!%p538_p10), 1  }
  0x17   : > { %s6055_s3 = sld [smem:[#allocation10_spill]] (!%p538_p10) }
  0x18   : > { %s6056_s20 = sld [smem:[#allocation8_spill]] (!%p538_p10) }
  0x1a   : > { %vm671_vm0 = vcmask 1046528   ;;  %v947_v1 = vld [vmem:[%s6030_s5 + $0x8] sm:$0x7f]  ;;  %v946_v3 = vld [vmem:[%s6030_s5] sm:$0xff]  ;;  %s620_s29 = scalar_select %p619_p11, %s4586_s24, 1  ;;  %vm664_vm1 = vcmask 121856   ;;  %v756_v33 = vlaneseq }
  0x1b   : > { %v663_v0 = vld [vmem:[%s6053_s4 + $0x8] sm:$0x7f]  ;;  %v662_v2 = vld [vmem:[%s6053_s4] sm:$0xff]  ;;  %4078 = vmatprep.subr.msk.mxu1 %vm671_vm0, %v947_v1  ;;  %v1183_v10 = vld [vmem:[%s6031_s6 + $0x38] sm:$0xff]  ;;  %v4596_v31 = vmov 1966171168  }
  0x1c   : > { %4071 = vmatprep.subr.msk.mxu0 %vm671_vm0, %v663_v0  ;;  %v1184_v4 = vld [vmem:[%s6031_s6 + $0x40] sm:$0xff]  ;;  %4079 = vmatpush3.msk.msra.mxu1 %vm671_vm0, %v947_v1  ;;  %s4760_s25 = sshll.u32 %s620_s29, 7  ;;  %s3865_s28 = sshll.u32 %s620_s29, 4  ;;  %v1182_v24 = vld [vmem:[%s6031_s6 + $0x30] sm:$0xff]  ;;  %v1181_v25 = vld [vmem:[%s6031_s6 + $0x28] sm:$0xff]  ;;  %v754_v32 = vunpack.c.l.s4 %v4596_v31  ;;  %v4830_v35 = vshrl.u32 %v756_v33, 7 }
  0x1d   : > { %4072 = vmatpush3.msk.msra.mxu0 %vm671_vm0, %v663_v0  ;;  %4080 = vmatprep.subr.mxu1 %v946_v3  ;;  %s646_s30 = scalar_lea.vmem %s6054_s2, %s3865_s28  ;;  %s4769_s4 = scalar_lea.vmem %s6055_s3, %s4760_s25  ;;  %v1180_v26 = vld [vmem:[%s6031_s6 + $0x20] sm:$0xff]  ;;  %v1179_v27 = vld [vmem:[%s6031_s6 + $0x18] sm:$0xff]  ;;  %v1178_v28 = vld [vmem:[%s6031_s6 + $0x10] sm:$0xff]  ;;  %vm1185_vm2 = vcmask 588800   ;;  %vm1675_vm3 = vcmask 1040384  }
  0x1e   : > { %4073 = vmatprep.subr.mxu0 %v662_v2  ;;  %4081 = vmatpush3.msra.mxu1 %v946_v3  ;;  %v660_v5 = vld [vmem:[%s646_s30] sm:$0xff]  ;;  %v661_v6 = vld [vmem:[%s646_s30 + $0x8] sm:$0xff]  ;;  %v932_v9 = vld [vmem:[%s4769_s4 + $0x10] sm:$0xff]  ;;  %v755_v34 = vunpack.c.0.s8 %v754_v32  ;;  %v4834_v47 = vsub.s32 0, %v4830_v35  ;;  %s5062_s27 = scalar_lea.vmem %s6056_s20, %s4760_s25  ;;  %s5090_s28 = scalar_lea.vmem %s6026_s1, %s4760_s25 }
  0x1f   : > { %4074 = vmatpush3.msra.mxu0 %v662_v2  ;;  %4206 = vmatprep.subr.mxu1 %v1184_v4  ;;  %v930_v7 = vld [vmem:[%s4769_s4] sm:$0xff]  ;;  %v931_v8 = vld [vmem:[%s4769_s4 + $0x8] sm:$0xff]  ;;  %v933_v11 = vld [vmem:[%s4769_s4 + $0x18] sm:$0xff]  ;;  %s615_s25 = sand.u32 1, %s4578_s22   ;;  %s4600_s2 = smov [#allocation2]  }
  0x20   : > { %4106 = vmatprep.subr.mxu0 %v1184_v4  ;;  %4075 = vmatprep.mubr.msk.f32.mxu0 %vm664_vm1, %v660_v5  ;;  %v934_v12 = vld [vmem:[%s4769_s4 + $0x20] sm:$0xff]  ;;  %v935_v13 = vld [vmem:[%s4769_s4 + $0x28] sm:$0xff]  ;;  %v936_v14 = vld [vmem:[%s4769_s4 + $0x30] sm:$0xff]  ;;  %v758_v38 = vsub.s32 %v755_v34, %v4830_v35  ;;  %s4522_s3 = sshll.u32 %s4600_s2, 4  ;;  %s4523_s3 = int_to_ptr.vmem [resolvable:$false] %s4522_s3 }
  0x21   : > { %4082 = vmatprep.mubr.msk.f32.mxu1 %vm664_vm1, %v930_v7  ;;  %4076 = vmatmul.mubr.msk.f32.vlgmr.msra.gmra.mxu0 %vm664_vm1, %v661_v6  ;;  %v937_v15 = vld [vmem:[%s4769_s4 + $0x38] sm:$0xff]  ;;  %v938_v16 = vld [vmem:[%s4769_s4 + $0x40] sm:$0xff]  ;;  %v939_v17 = vld [vmem:[%s4769_s4 + $0x48] sm:$0xff] }
  0x22   : > { %4083 = vmatmul.mubr.msk.f32.vlgmr.msra.gmra.mxu1 %vm664_vm1, %v931_v8  ;;  %4107 = vmatpush3.msra.mxu0 %v1184_v4  ;;  %v940_v18 = vld [vmem:[%s4769_s4 + $0x50] sm:$0xff]  ;;  %v941_v19 = vld [vmem:[%s4769_s4 + $0x58] sm:$0xff]  ;;  %v942_v20 = vld [vmem:[%s4769_s4 + $0x60] sm:$0xff] }
  0x23   : > { %4085 = vmatprep.mubr.msk.f32.mxu1 %vm664_vm1, %v932_v9  ;;  %4108 = vmatprep.subr.mxu0 %v1183_v10  ;;  %v943_v21 = vld [vmem:[%s4769_s4 + $0x68] sm:$0xff]  ;;  %v944_v22 = vld [vmem:[%s4769_s4 + $0x70] sm:$0xff]  ;;  %v945_v23 = vld [vmem:[%s4769_s4 + $0x78] sm:$0xff]  ;;  %s3687_s4 = sshll.u32 %s615_s25, 6 }
  0x24   : > { %4215 = vmatpush3.msra.mxu1 %v1184_v4  ;;  %4109 = vmatpush3.msra.mxu0 %v1183_v10  ;;  %v1177_v29 = vld [vmem:[%s6031_s6 + $0x8] sm:$0xff]  ;;  %v1176_v30 = vld [vmem:[%s6031_s6] sm:$0xff] }
  0x25   : > { %4207 = vmatprep.subr.mxu1 %v1183_v10  ;;  %4110 = vmatprep.subr.mxu0 %v1182_v24 }
  0x26   : > { %4086 = vmatmul.mubr.msk.f32.gmra.mxu1 %vm664_vm1, %v933_v11  ;;  %4111 = vmatpush3.msra.mxu0 %v1182_v24 }
  0x27   : > { %4088 = vmatprep.mubr.msk.f32.mxu1 %vm664_vm1, %v934_v12  ;;  %4216 = vmatpush3.msra.mxu1 %v1183_v10 }
  0x28   : > { %4208 = vmatprep.subr.mxu1 %v1182_v24  ;;  %4112 = vmatprep.subr.mxu0 %v1181_v25 }
  0x29   : > { %4217 = vmatpush3.msra.mxu1 %v1182_v24  ;;  %4113 = vmatpush3.msra.mxu0 %v1181_v25 }
  0x2a   : > { %4089 = vmatmul.mubr.msk.f32.gmra.mxu1 %vm664_vm1, %v935_v13  ;;  %4209 = vmatprep.subr.mxu1 %v1181_v25 }
  0x2b   : > { %4091 = vmatprep.mubr.msk.f32.mxu1 %vm664_vm1, %v936_v14  ;;  %4218 = vmatpush3.msra.mxu1 %v1181_v25 }
  0x2c   : > { %4114 = vmatprep.subr.mxu0 %v1180_v26  ;;  %4210 = vmatprep.subr.mxu1 %v1180_v26 }
  0x2d   : > { %4115 = vmatpush3.msra.mxu0 %v1180_v26  ;;  %4219 = vmatpush3.msra.mxu1 %v1180_v26 }
  0x2e   : > { %4092 = vmatmul.mubr.msk.f32.gmra.mxu1 %vm664_vm1, %v937_v15  ;;  %4116 = vmatprep.subr.mxu0 %v1179_v27 }
  0x2f   : > { %4094 = vmatprep.mubr.msk.f32.mxu1 %vm664_vm1, %v938_v16  ;;  %4211 = vmatprep.subr.mxu1 %v1179_v27 }
  0x30   : > { %4117 = vmatpush3.msra.mxu0 %v1179_v27  ;;  %4220 = vmatpush3.msra.mxu1 %v1179_v27 }
  0x31   : > { %4118 = vmatprep.subr.mxu0 %v1178_v28  ;;  %4212 = vmatprep.subr.mxu1 %v1178_v28 }
  0x32   : > { %4095 = vmatmul.mubr.msk.f32.gmra.mxu1 %vm664_vm1, %v939_v17  ;;  %4119 = vmatpush3.msra.mxu0 %v1178_v28 }
  0x33   : > { %4097 = vmatprep.mubr.msk.f32.mxu1 %vm664_vm1, %v940_v18  ;;  %4221 = vmatpush3.msra.mxu1 %v1178_v28 }
  0x34   : > { %4120 = vmatprep.subr.mxu0 %v1177_v29  ;;  %4213 = vmatprep.subr.mxu1 %v1177_v29 }
  0x35   : > { %4121 = vmatpush3.msra.mxu0 %v1177_v29  ;;  %4222 = vmatpush3.msra.mxu1 %v1177_v29 }
  0x36   : > { %4098 = vmatmul.mubr.msk.f32.gmra.mxu1 %vm664_vm1, %v941_v19  ;;  %4122 = vmatprep.subr.mxu0 %v1176_v30 }
  0x37   : > { %4100 = vmatprep.mubr.msk.f32.mxu1 %vm664_vm1, %v942_v20  ;;  %4214 = vmatprep.subr.mxu1 %v1176_v30 }
  0x38   : > { %4123 = vmatpush3.msra.mxu0 %v1176_v30  ;;  %4223 = vmatpush3.msra.mxu1 %v1176_v30 }
  0x3a   : > { %4101 = vmatmul.mubr.msk.f32.gmra.mxu1 %vm664_vm1, %v943_v21 }
  0x3b   : > { %4103 = vmatprep.mubr.msk.f32.mxu1 %vm664_vm1, %v944_v22 }
  0x3e   : > { %4104 = vmatmul.mubr.msk.f32.gmra.mxu1 %vm664_vm1, %v945_v23 }
  0xe1   : > { %v4077_v36 = vpop.f32.mrf.mxu0 }
  0xe2   : > { %v4084_v37 = vpop.f32.mrf.mxu1  ;;  %v801_v49 = vcombine.high %v4077_v36, %v4077_v36  ;;  %v808_v62 = vrot.slane %v4077_v36, %v758_v38 }
  0xe3   : > { %v741_v39 = vpop.f32.mrf.mxu0 }
  0xe4   : > { %v1065_v40 = vpop.f32.mrf.mxu1  ;;  %v752_v41 = vcombine.high %v741_v39, %v741_v39  ;;  %v759_v42 = vrot.slane %v741_v39, %v758_v38  ;;  %v815_v63 = vrot.slane %v801_v49, %v758_v38  ;;  %v816_v14 = vcombine.high %v808_v62, %v808_v62 }
  0xe5   : > { %v824_v17 = vrot.slane %v808_v62, %v758_v38 }
  0xe6   : > { %v4087_v43 = vpop.f32.mrf.mxu1  ;;  %v766_v44 = vrot.slane %v752_v41, %v758_v38  ;;  %v767_v45 = vcombine.high %v759_v42, %v759_v42  ;;  %v775_v46 = vrot.slane %v759_v42, %v758_v38  ;;  %v817_v15 = vcombine.high %v815_v63, %v815_v63 }
  0xe7   : > { %v838_v25 = vrot.slane %v816_v14, %v758_v38  ;;  %v885_v28 = vrot.slane %v824_v17, %v4834_v47  ;;  %v846_v29 = vcombine.high %v824_v17, %v824_v17  ;;  %v831_v30 = vrot.slane %v815_v63, %v758_v38  ;;  %v1592_v14 = vld [vmem:[%s6032_s7 + $0x20] sm:$0xff]  ;;  %v1594_v17 = vld [vmem:[%s6032_s7 + $0x30] sm:$0xff] }
  0xe8   : > { %v1075_v48 = vpop.f32.mrf.mxu1  ;;  %v768_v50 = vcombine.high %v766_v44, %v766_v44  ;;  %v782_v51 = vrot.slane %v766_v44, %v758_v38  ;;  %v789_v52 = vrot.slane %v767_v45, %v758_v38  ;;  %v853_v53 = vrot.slane %v775_v46, %v4834_v47 }
  0xe9   : > { %v797_v54 = vcombine.high %v775_v46, %v775_v46  ;;  %v845_v27 = vrot.slane %v817_v15, %v758_v38  ;;  %v889_v39 = vrot.slane %v838_v25, %v4834_v47  ;;  %v893_v44 = vrot.slane %v846_v29, %v4834_v47  ;;  %v1595_v15 = vld [vmem:[%s6032_s7 + $0x38] sm:$0xff] }
  0xea   : > { %v4090_v55 = vpop.f32.mrf.mxu1  ;;  %v796_v56 = vrot.slane %v768_v50, %v758_v38  ;;  %v857_v57 = vrot.slane %v789_v52, %v4834_v47  ;;  %v1144_v58 = vsub.f32 %v853_v53, %v1065_v40  ;;  %v799_v59 = vcombine.high %v789_v52, %v789_v52 }
  0xeb   : > { %v861_v60 = vrot.slane %v797_v54, %v4834_v47  ;;  %v869_v0 = vrot.slane %v782_v51, %v4834_v47  ;;  %v798_v7 = vcombine.high %v782_v51, %v782_v51  ;;  %v848_v40 = vcombine.high %v838_v25, %v838_v25 }
  0xec   : > { %v1085_v61 = vpop.f32.mrf.mxu1  ;;  %v1145_v1 = vsub.f32 %v857_v57, %v4084_v37  ;;  %v1160_v2 = vmul.f32 %v1144_v58, %v1144_v58  ;;  %v865_v3 = vrot.slane %v799_v59, %v4834_v47  ;;  %v873_v6 = vrot.slane %v796_v56, %v4834_v47 }
  0xed   : > { %v1146_v4 = vsub.f32 %v861_v60, %v1075_v48  ;;  %v800_v11 = vcombine.high %v796_v56, %v796_v56  ;;  %v1148_v13 = vsub.f32 %v869_v0, %v1085_v61  ;;  %v877_v18 = vrot.slane %v798_v7, %v4834_v47  ;;  %v1597_v7 = vld [vmem:[%s6032_s7 + $0x48] sm:$0xff] }
  0xee   : > { %v4093_v5 = vpop.f32.mrf.mxu1  ;;  %v1161_v8 = vmul.f32 %v1145_v1, %v1145_v1  ;;  %v1147_v9 = vsub.f32 %v865_v3, %v4087_v43  ;;  %4124 = vmatprep.mubr.msk.f32.mxu0 %vm1185_vm2, %v1160_v2  ;;  %v1149_v20 = vsub.f32 %v873_v6, %v4090_v55  ;;  %v905_v41 = vrot.slane %v845_v27, %v4834_v47  ;;  %v1600_v6 = vld [vmem:[%s6032_s7 + $0x60] sm:$0x1] }
  0xef   : > { %v1162_v10 = vmul.f32 %v1146_v4, %v1146_v4  ;;  %v881_v21 = vrot.slane %v800_v11, %v4834_v47  ;;  %v1164_v23 = vmul.f32 %v1148_v13, %v1148_v13  ;;  %v849_v43 = vcombine.high %v845_v27, %v845_v27  ;;  %v1599_v11 = vld [vmem:[%s6032_s7 + $0x58] sm:$0xff]  ;;  %v1598_v13 = vld [vmem:[%s6032_s7 + $0x50] sm:$0xff] }
  0xf0   : > { %v1095_v12 = vpop.f32.mrf.mxu1  ;;  %4125 = vmatmul.mubr.msk.f32.vlgmr.msra.gmra.mxu0 %vm1185_vm2, %v1161_v8  ;;  %v1163_v19 = vmul.f32 %v1147_v9, %v1147_v9  ;;  %v1165_v31 = vmul.f32 %v1149_v20, %v1149_v20  ;;  %v901_v38 = vrot.slane %v831_v30, %v4834_v47  ;;  %v847_v45 = vcombine.high %v831_v30, %v831_v30  ;;  %v1603_v8 = vld [vmem:[%s6032_s7 + $0x78] sm:$0x1]  ;;  %v1602_v9 = vld [vmem:[%s6032_s7 + $0x70] sm:$0x1]  ;;  %v1588_v30 = vld [vmem:[%s6032_s7] sm:$0xff] }
  0xf1   : > { %4127 = vmatprep.mubr.msk.f32.mxu0 %vm1185_vm2, %v1162_v10  ;;  %v1150_v24 = vsub.f32 %v877_v18, %v1095_v12  ;;  %v1151_v32 = vsub.f32 %v881_v21, %v4093_v5  ;;  %v897_v54 = vrot.slane %v848_v40, %v4834_v47  ;;  %v913_v55 = vrot.slane %v849_v43, %v4834_v47  ;;  %v1601_v5 = vld [vmem:[%s6032_s7 + $0x68] sm:$0x1]  ;;  %v1596_v10 = vld [vmem:[%s6032_s7 + $0x40] sm:$0xff]  ;;  %v1591_v18 = vld [vmem:[%s6032_s7 + $0x18] sm:$0xff] }
  0xf2   : > { %v4096_v16 = vpop.f32.mrf.mxu1  ;;  %v909_v58 = vrot.slane %v847_v45, %v4834_v47  ;;  %3732 = vmatprep.subr.msk.mxu1 %vm1675_vm3, %v1601_v5  ;;  %3750 = vmatprep.subr.msk.mxu0 %vm1675_vm3, %v1603_v8  ;;  %v1593_v12 = vld [vmem:[%s6032_s7 + $0x28] sm:$0xff] }
  0xf3   : > { %v1166_v36 = vmul.f32 %v1150_v24, %v1150_v24  ;;  %v1167_v46 = vmul.f32 %v1151_v32, %v1151_v32  ;;  %v1153_v48 = vsub.f32 %v889_v39, %v4096_v16  ;;  %3751 = vmatpush1.msk.msra.mxu0 %vm1675_vm3, %v1602_v9  ;;  %v1589_v16 = vld [vmem:[%s6032_s7 + $0x8] sm:$0xff] }
  0xf4   : > { %v1105_v22 = vpop.f32.mrf.mxu1  ;;  %4128 = vmatmul.mubr.msk.f32.gmra.mxu0 %vm1185_vm2, %v1163_v19  ;;  %1875 = vmatprep.subr.mxu0 %v1599_v11 }
  0xf5   : > { %4130 = vmatprep.mubr.msk.f32.mxu0 %vm1185_vm2, %v1164_v23  ;;  %v1152_v37 = vsub.f32 %v885_v28, %v1105_v22  ;;  %v1169_v59 = vmul.f32 %v1153_v48, %v1153_v48  ;;  %1876 = vmatpush1.msra.mxu0 %v1598_v13 }
  0xf6   : > { %v4099_v26 = vpop.f32.mrf.mxu1  ;;  %1877 = vmatprep.subr.mxu0 %v1595_v15 }
  0xf7   : > { %v1168_v51 = vmul.f32 %v1152_v37, %v1152_v37  ;;  %v1155_v60 = vsub.f32 %v897_v54, %v4099_v26  ;;  %1878 = vmatpush1.msra.mxu0 %v1594_v17 }
  0xf8   : > { %v1115_v34 = vpop.f32.mrf.mxu1  ;;  %4131 = vmatmul.mubr.msk.f32.gmra.mxu0 %vm1185_vm2, %v1165_v31  ;;  %1879 = vmatprep.subr.mxu0 %v1591_v18  ;;  %v1590_v31 = vld [vmem:[%s6032_s7 + $0x10] sm:$0xff] }
  0xf9   : > { %4133 = vmatprep.mubr.msk.f32.mxu0 %vm1185_vm2, %v1166_v36  ;;  %v1154_v52 = vsub.f32 %v893_v44, %v1115_v34  ;;  %v1171_v3 = vmul.f32 %v1155_v60, %v1155_v60  ;;  %v4597_v34 = vmov 0.0   ;;  %1880 = vmatpush1.msra.mxu0 %v1590_v31 }
  0xfa   : > { %v4102_v42 = vpop.f32.mrf.mxu1 }
  0xfb   : > { %v1157_v49 = vsub.f32 %v905_v41, %v4102_v42  ;;  %v1170_v0 = vmul.f32 %v1154_v52, %v1154_v52 }
  0xfc   : > { %v1125_v50 = vpop.f32.mrf.mxu1  ;;  %4134 = vmatmul.mubr.msk.f32.gmra.mxu0 %vm1185_vm2, %v1167_v46 }
  0xfd   : > { %v1156_v53 = vsub.f32 %v901_v38, %v1125_v50  ;;  %4136 = vmatprep.mubr.msk.f32.mxu0 %vm1185_vm2, %v1168_v51  ;;  %v1173_v61 = vmul.f32 %v1157_v49, %v1157_v49 }
  0xfe   : > { %v4105_v56 = vpop.f32.mrf.mxu1 }
  0xff   : > { %v1172_v57 = vmul.f32 %v1156_v53, %v1156_v53  ;;  %v1159_v62 = vsub.f32 %v913_v55, %v4105_v56 }
 0x100   : > { %v1135_v63 = vpop.f32.mrf.mxu1  ;;  %4137 = vmatmul.mubr.msk.f32.gmra.mxu0 %vm1185_vm2, %v1169_v59 }
 0x101   : > { %v1158_v1 = vsub.f32 %v909_v58, %v1135_v63  ;;  %4142 = vmatprep.mubr.msk.f32.mxu1 %vm1185_vm2, %v1172_v57  ;;  %4139 = vmatprep.mubr.msk.f32.mxu0 %vm1185_vm2, %v1170_v0  ;;  %v1175_v4 = vmul.f32 %v1159_v62, %v1159_v62 }
 0x102   : > { %4143 = vmatmul.mubr.msk.f32.vlgmr.msra.gmra.mxu1 %vm1185_vm2, %v1173_v61 }
 0x103   : > { %v1174_v2 = vmul.f32 %v1158_v1, %v1158_v1  ;;  %3733 = vmatpush1.msk.msra.mxu1 %vm1675_vm3, %v1600_v6 }
 0x104   : > { %4140 = vmatmul.mubr.msk.f32.gmra.mxu0 %vm1185_vm2, %v1171_v3  ;;  %1714 = vmatprep.subr.mxu1 %v1597_v7 }
 0x105   : > { %4145 = vmatprep.mubr.msk.f32.mxu1 %vm1185_vm2, %v1174_v2  ;;  %1715 = vmatpush1.msra.mxu1 %v1596_v10 }
 0x106   : > { %4146 = vmatmul.mubr.msk.f32.gmra.mxu1 %vm1185_vm2, %v1175_v4  ;;  %1716 = vmatprep.subr.mxu1 %v1593_v12 }
 0x107   : > { %1717 = vmatpush1.msra.mxu1 %v1592_v14  ;;  %1752 = vmatprep.mubr.f32.mxu1 %v4597_v34 }
 0x108   : > { %1718 = vmatprep.subr.mxu1 %v1589_v16  ;;  %1913 = vmatprep.mubr.f32.mxu0 %v4597_v34 }
 0x109   : > { %1719 = vmatpush1.msra.mxu1 %v1588_v30 }
 0x1b0   : > { %v4126_v19 = vpop.f32.mrf.mxu0 }
 0x1b1   : > { %v4914_v20 = vadd.f32 1e-06, %v4126_v19 }
 0x1b2   : > { %v1300_v21 = vpop.f32.mrf.mxu0 }
 0x1b3   : > { %4326 = vrsqrt.f32 %v4914_v20  ;;  %v1301_v22 = vadd.f32 1e-06, %v1300_v21  ;;  %vm1388_vm6 = vcmp.eq.f32.partialorder %v4914_v20, inf  ;;  %vm1390_vm7 = vcmp.eq.f32.partialorder %v4914_v20, 0.0 }
 0x1b4   : > { %v4129_v23 = vpop.f32.mrf.mxu0  ;;  %v1391_v5 = vand.u32 2147483648, %v4914_v20 }
 0x1b5   : > { %4328 = vrsqrt.f32 %v1301_v22  ;;  %v4917_v24 = vadd.f32 1e-06, %v4129_v23  ;;  %vm1381_vm4 = vcmp.eq.f32.partialorder %v1301_v22, inf  ;;  %vm1383_vm5 = vcmp.eq.f32.partialorder %v1301_v22, 0.0 }
 0x1b6   : > { %v1310_v25 = vpop.f32.mrf.mxu0  ;;  %v1384_v55 = vand.u32 2147483648, %v1301_v22 }
 0x1b7   : > { %4330 = vrsqrt.f32 %v4917_v24  ;;  %v4920_v26 = vadd.f32 1e-06, %v1310_v25  ;;  %vm1402_vm10 = vcmp.eq.f32.partialorder %v4917_v24, inf  ;;  %v1405_v16 = vand.u32 2147483648, %v4917_v24 }
 0x1b8   : > { %v4132_v27 = vpop.f32.mrf.mxu0  ;;  %vm1404_vm12 = vcmp.eq.f32.partialorder %v4917_v24, 0.0 }
 0x1b9   : > { %4332 = vrsqrt.f32 %v4920_v26  ;;  %v4923_v28 = vadd.f32 1e-06, %v4132_v27  ;;  %vm1395_vm8 = vcmp.eq.f32.partialorder %v4920_v26, inf  ;;  %v1398_v6 = vand.u32 2147483648, %v4920_v26 }
 0x1ba   : > { %v1320_v29 = vpop.f32.mrf.mxu0  ;;  %vm1397_vm9 = vcmp.eq.f32.partialorder %v4920_v26, 0.0 }
 0x1bb   : > { %4334 = vrsqrt.f32 %v4923_v28  ;;  %v4932_v32 = vadd.f32 1e-06, %v1320_v29  ;;  %vm1416_vm14 = vcmp.eq.f32.partialorder %v4923_v28, inf  ;;  %vm1418_vm0 = vcmp.eq.f32.partialorder %v4923_v28, 0.0 }
 0x1bc   : > { %v4135_v36 = vpop.f32.mrf.mxu0 }
 0x1bd   : > { %4336 = vrsqrt.f32 %v4932_v32  ;;  %v4937_v37 = vadd.f32 1e-06, %v4135_v36  ;;  %vm1409_vm11 = vcmp.eq.f32.partialorder %v4932_v32, inf  ;;  %v1412_v17 = vand.u32 2147483648, %v4932_v32 }
 0x1be   : > { %v1330_v39 = vpop.f32.mrf.mxu0  ;;  %vm1411_vm13 = vcmp.eq.f32.partialorder %v4932_v32, 0.0 }
 0x1bf   : > { %4338 = vrsqrt.f32 %v4937_v37  ;;  %v4940_v40 = vadd.f32 1e-06, %v1330_v39  ;;  %vm1430_vm2 = vcmp.eq.f32.partialorder %v4937_v37, inf }
 0x1c0   : > { %v4327_v41 = vpop.eup %4326  ;;  %v4138_v42 = vpop.f32.mrf.mxu0 }
 0x1c1   : > { %4340 = vrsqrt.f32 %v4940_v40  ;;  %v4943_v44 = vadd.f32 1e-06, %v4138_v42  ;;  %v1387_v48 = vmul.f32 %v4327_v41, %v4914_v20  ;;  %vm1423_vm15 = vcmp.eq.f32.partialorder %v4940_v40, inf }
 0x1c2   : > { %v4144_v43 = vpop.f32.mrf.mxu1  ;;  %v4329_v38 = vpop.eup %4328  ;;  %v1426_v27 = vand.u32 2147483648, %v4940_v40  ;;  %vm1425_vm1 = vcmp.eq.f32.partialorder %v4940_v40, 0.0 }
 0x1c3   : > { %v1340_v45 = vpop.f32.mrf.mxu0  ;;  %4342 = vrsqrt.f32 %v4943_v44  ;;  %v1380_v51 = vmul.f32 %v4329_v38, %v1301_v22  ;;  %v4952_v56 = vadd.f32 1e-06, %v4144_v43  ;;  %v1389_v63 = vsel %vm1388_vm6, %v4914_v20, %v1387_v48 }
 0x1c4   : > { %v1360_v46 = vpop.f32.mrf.mxu1  ;;  %v4947_v49 = vadd.f32 1e-06, %v1340_v45  ;;  %v4331_v52 = vpop.eup %4330  ;;  %v1392_v10 = vsel %vm1390_vm7, %v1391_v5, %v1389_v63  ;;  %v1433_v43 = vand.u32 2147483648, %v4937_v37  ;;  %vm1444_vm7 = vcmp.eq.f32.partialorder %v4943_v44, inf }
 0x1c5   : > { %v4949_v50 = vadd.f32 1e-06, %v1360_v46  ;;  %v4141_v53 = vpop.f32.mrf.mxu0  ;;  %v1382_v58 = vsel %vm1381_vm4, %v1301_v22, %v1380_v51  ;;  %v1401_v0 = vmul.f32 %v4331_v52, %v4917_v24 }
 0x1c6   : > { %v4147_v54 = vpop.f32.mrf.mxu1  ;;  %4344 = vrsqrt.f32 %v4947_v49  ;;  %v4955_v57 = vadd.f32 1e-06, %v4141_v53  ;;  %v4333_v59 = vpop.eup %4332  ;;  %v1385_v61 = vsel %vm1383_vm5, %v1384_v55, %v1382_v58  ;;  %vm1437_vm4 = vcmp.eq.f32.partialorder %v4947_v49, inf }
 0x1c7   : > { %4346 = vrsqrt.f32 %v4949_v50  ;;  %v1350_v60 = vpop.f32.mrf.mxu0  ;;  %1523 = vrot.lane.b32.xlu0 %v1385_v61, %s4598_s19  ;;  %v1394_v3 = vmul.f32 %v4333_v59, %v4920_v26  ;;  %v4976_v9 = vadd.f32 1e-06, %v4147_v54  ;;  %v1403_v12 = vsel %vm1402_vm10, %v4917_v24, %v1401_v0 }
 0x1c8   : > { %v1370_v62 = vpop.f32.mrf.mxu1  ;;  %4348 = vrsqrt.f32 %v4955_v57  ;;  %v4961_v1 = vadd.f32 1e-06, %v1350_v60  ;;  %v4335_v4 = vpop.eup %4334  ;;  %v1406_v20 = vsel %vm1404_vm12, %v1405_v16, %v1403_v12  ;;  %vm1432_vm5 = vcmp.eq.f32.partialorder %v4937_v37, 0.0 }
 0x1c9   : > { %v4964_v2 = vadd.f32 1e-06, %v1370_v62  ;;  %v1396_v7 = vsel %vm1395_vm8, %v4920_v26, %v1394_v3  ;;  %v1415_v14 = vmul.f32 %v4335_v4, %v4923_v28  ;;  %v1419_v26 = vand.u32 2147483648, %v4923_v28 }
 0x1ca   : > { %4350 = vrsqrt.f32 %v4961_v1  ;;  %v4337_v8 = vpop.eup %4336  ;;  %v1399_v11 = vsel %vm1397_vm9, %v1398_v6, %v1396_v7  ;;  %vm1439_vm6 = vcmp.eq.f32.partialorder %v4947_v49, 0.0  ;;  %vm1451_vm8 = vcmp.eq.f32.partialorder %v4961_v1, inf }
 0x1cb   : > { %4352 = vrsqrt.f32 %v4952_v56  ;;  %1525 = vrot.lane.b32.xlu0 %v1392_v10, %s4598_s19  ;;  %1527 = vrot.lane.b32.xlu1 %v1399_v11, %s4598_s19  ;;  %v1408_v13 = vmul.f32 %v4337_v8, %v4932_v32  ;;  %v1417_v22 = vsel %vm1416_vm14, %v4923_v28, %v1415_v14  ;;  %v1454_v58 = vand.u32 2147483648, %v4961_v1 }
 0x1cc   : > { %4354 = vrsqrt.f32 %v4964_v2  ;;  %v4339_v15 = vpop.eup %4338  ;;  %v1420_v31 = vsel %vm1418_vm0, %v1419_v26, %v1417_v22  ;;  %vm1446_vm9 = vcmp.eq.f32.partialorder %v4943_v44, 0.0  ;;  %vm1453_vm10 = vcmp.eq.f32.partialorder %v4961_v1, 0.0  ;;  %v2273_v22 = vld [vmem:[%s5062_s27 + $0x38] sm:$0xff] }
 0x1cd   : > { %v1410_v18 = vsel %vm1409_vm11, %v4932_v32, %v1408_v13  ;;  %4356 = vrsqrt.f32 %v4976_v9  ;;  %v1429_v24 = vmul.f32 %v4339_v15, %v4937_v37  ;;  %vm1458_vm11 = vcmp.eq.f32.partialorder %v4955_v57, inf  ;;  %v2277_v26 = vld [vmem:[%s5062_s27 + $0x58] sm:$0xff] }
 0x1ce   : > { %v4341_v19 = vpop.eup %4340  ;;  %v1413_v21 = vsel %vm1411_vm13, %v1412_v17, %v1410_v18  ;;  %vm1465_vm12 = vcmp.eq.f32.partialorder %v4949_v50, inf  ;;  %v1468_v4 = vand.u32 2147483648, %v4949_v50  ;;  %vm1460_vm13 = vcmp.eq.f32.partialorder %v4955_v57, 0.0  ;;  %v2269_v17 = vld [vmem:[%s5062_s27 + $0x18] sm:$0xff] }
 0x1cf   : > { %1529 = vrot.lane.b32.xlu1 %v1406_v20, %s4598_s19  ;;  %1531 = vrot.lane.b32.xlu0 %v1413_v21, %s4598_s19  ;;  %v1422_v23 = vmul.f32 %v4341_v19, %v4940_v40  ;;  %v1431_v41 = vsel %vm1430_vm2, %v4937_v37, %v1429_v24  ;;  %vm1467_vm14 = vcmp.eq.f32.partialorder %v4949_v50, 0.0  ;;  %vm1479_vm0 = vcmp.eq.f32.partialorder %v4964_v2, inf  ;;  %v4288_v18 = vld [vmem:[%s6036_s11 + $0x78] sm:$0xff]   ;;  %v2270_v19 = vld [vmem:[%s5062_s27 + $0x20] sm:$0xff] }
 0x1d0   : > { %v4343_v25 = vpop.eup %4342  ;;  %v1434_v46 = vsel %vm1432_vm5, %v1433_v43, %v1431_v41  ;;  %vm1481_vm2 = vcmp.eq.f32.partialorder %v4964_v2, 0.0  ;;  %v1489_v14 = vand.u32 2147483648, %v4976_v9  ;;  %vm1488_vm5 = vcmp.eq.f32.partialorder %v4976_v9, 0.0  ;;  %v2271_v20 = vld [vmem:[%s5062_s27 + $0x28] sm:$0xff]  ;;  %3978 = vmatprep.subr.bf16.mxu1 %v4288_v18  ;;  %v2272_v21 = vld [vmem:[%s5062_s27 + $0x30] sm:$0xff]  ;;  %v4296_v41 = vld [vmem:[%s6036_s11 + $0xb8] sm:$0xff]  }
 0x1d1   : > { %v1424_v29 = vsel %vm1423_vm15, %v4940_v40, %v1422_v23  ;;  %v1443_v36 = vmul.f32 %v4343_v25, %v4943_v44  ;;  %v1440_v40 = vand.u32 2147483648, %v4947_v49  ;;  %vm1472_vm15 = vcmp.eq.f32.partialorder %v4952_v56, inf  ;;  %v2274_v23 = vld [vmem:[%s5062_s27 + $0x40] sm:$0xff]  ;;  %v2275_v24 = vld [vmem:[%s5062_s27 + $0x48] sm:$0xff]  ;;  %v2276_v25 = vld [vmem:[%s5062_s27 + $0x50] sm:$0xff] }
 0x1d2   : > { %v1427_v32 = vsel %vm1425_vm1, %v1426_v27, %v1424_v29  ;;  %vm1474_vm1 = vcmp.eq.f32.partialorder %v4952_v56, 0.0  ;;  %v4599_v16 = vmov 0   ;;  %v2278_v27 = vld [vmem:[%s5062_s27 + $0x60] sm:$0xff]  ;;  %v2279_v29 = vld [vmem:[%s5062_s27 + $0x68] sm:$0xff] }
 0x1d3   : > { %v4345_v30 = vpop.eup %4344  ;;  %1533 = vrot.lane.b32.xlu1 %v1420_v31, %s4598_s19  ;;  %1535 = vrot.lane.b32.xlu0 %v1427_v32, %s4598_s19  ;;  %v1445_v51 = vsel %vm1444_vm7, %v4943_v44, %v1443_v36  ;;  %v2281_v31 = vld [vmem:[%s5062_s27 + $0x78] sm:$0xff]  ;;  %v1491_v32 = vld [vmem:[%s5090_s28] sm:$0xff]  ;;  %vm1626_vm7 = vcmask 203776  }
 0x1d4   : > { %v4347_v39 = vpop.eup %4346  ;;  %v1436_v28 = vmul.f32 %v4345_v30, %v4947_v49  ;;  %4287 = vset.pattern.permute.xlu1 %v4599_v16  ;;  %4286 = vset.pattern.permute.xlu0 %v4599_v16  ;;  %v2280_v30 = vld [vmem:[%s5062_s27 + $0x70] sm:$0xff]  ;;  %v1492_v43 = vld [vmem:[%s5090_s28 + $0x8] sm:$0xff]  ;;  %v1503_v18 = vld [vmem:[%s5090_s28 + $0x60] sm:$0xff] }
 0x1d5   : > { %v4349_v42 = vpop.eup %4348  ;;  %v1464_v54 = vmul.f32 %v4347_v39, %v4949_v50  ;;  %2751 = vmatprep.subr.bf16.mxu0 %v4599_v16  ;;  %v4289_v39 = vld [vmem:[%s6036_s11 + $0x38] sm:$0xff]  }
 0x1d6   : > { %v1438_v38 = vsel %vm1437_vm4, %v4947_v49, %v1436_v28  ;;  %v1457_v37 = vmul.f32 %v4349_v42, %v4955_v57  ;;  %v1447_v49 = vand.u32 2147483648, %v4943_v44  ;;  %vm1486_vm4 = vcmp.eq.f32.partialorder %v4976_v9, inf  ;;  %v4290_v42 = vld [vmem:[%s6036_s11 + $0x70] sm:$0xff]  }
 0x1d7   : > { %v4351_v45 = vpop.eup %4350  ;;  %v1441_v48 = vsel %vm1439_vm6, %v1440_v40, %v1438_v38  ;;  %1537 = vrot.lane.b32.xlu1 %v1434_v46, %s4598_s19  ;;  %v1466_v44 = vsel %vm1465_vm12, %v4949_v50, %v1464_v54  ;;  %v1482_v50 = vand.u32 2147483648, %v4964_v2  ;;  %vm1571_vm6 = vcmask 7168  }
 0x1d8   : > { %v4353_v52 = vpop.eup %4352  ;;  %1539 = vrot.lane.b32.xlu0 %v1441_v48, %s4598_s19  ;;  %v1450_v53 = vmul.f32 %v4351_v45, %v4961_v1  ;;  %v1448_v60 = vsel %vm1446_vm9, %v1447_v49, %v1445_v51  ;;  %v1459_v63 = vsel %vm1458_vm11, %v4955_v57, %v1457_v37  ;;  %v1469_v6 = vsel %vm1467_vm14, %v1468_v4, %v1466_v44  ;;  %v4291_v45 = vld [vmem:[%s6036_s11 + $0x30] sm:$0xff]   ;;  %v4292_v48 = vld [vmem:[%s6036_s11 + $0x68] sm:$0xff]   ;;  %v4294_v37 = vld [vmem:[%s6036_s11 + $0x60] sm:$0xff]  }
 0x1d9   : > { %v4355_v55 = vpop.eup %4354  ;;  %v1471_v62 = vmul.f32 %v4353_v52, %v4952_v56  ;;  %v1493_v51 = vld [vmem:[%s5090_s28 + $0x10] sm:$0xff]  ;;  %v4293_v52 = vld [vmem:[%s6036_s11 + $0x28] sm:$0xff]   ;;  %v4295_v49 = vld [vmem:[%s6036_s11 + $0x20] sm:$0xff]  }
 0x1da   : > { %v1452_v59 = vsel %vm1451_vm8, %v4961_v1, %v1450_v53  ;;  %v1478_v0 = vmul.f32 %v4355_v55, %v4964_v2  ;;  %v4357_v3 = vpop.eup %4356  ;;  %v1461_v1 = vand.u32 2147483648, %v4955_v57  ;;  %v1475_v57 = vand.u32 2147483648, %v4952_v56  ;;  %v1494_v55 = vld [vmem:[%s5090_s28 + $0x18] sm:$0xff]  ;;  %v1496_v44 = vld [vmem:[%s5090_s28 + $0x28] sm:$0xff] }
 0x1db   : > { %v1455_v61 = vsel %vm1453_vm10, %v1454_v58, %v1452_v59  ;;  %1541 = vrot.lane.b32.xlu1 %v1448_v60, %s4598_s19  ;;  %v1473_v7 = vsel %vm1472_vm15, %v4952_v56, %v1471_v62  ;;  %v1485_v10 = vmul.f32 %v4357_v3, %v4976_v9  ;;  %v2267_v56 = vld [vmem:[%s5062_s27 + $0x8] sm:$0xff]  ;;  %v4297_v59 = vld [vmem:[%s6036_s11 + $0x58] sm:$0xff]   ;;  %vm2629_vm8 = vcmask 130048  }
 0x1dc   : > { %1543 = vrot.lane.b32.xlu0 %v1455_v61, %s4598_s19  ;;  %v1462_v5 = vsel %vm1460_vm13, %v1461_v1, %v1459_v63  ;;  %v1480_v8 = vsel %vm1479_vm0, %v4964_v2, %v1478_v0  ;;  %v1476_v11 = vsel %vm1474_vm1, %v1475_v57, %v1473_v7  ;;  %v2266_v2 = vld [vmem:[%s5062_s27] sm:$0xff]  ;;  %v1497_v1 = vld [vmem:[%s5090_s28 + $0x30] sm:$0xff]  ;;  %vm2875_vm10 = vcmask 539648  }
 0x1dd   : > { %v1483_v12 = vsel %vm1481_vm2, %v1482_v50, %v1480_v8  ;;  %v1487_v13 = vsel %vm1486_vm4, %v4976_v9, %v1485_v10  ;;  %v2268_v9 = vld [vmem:[%s5062_s27 + $0x10] sm:$0xff]  ;;  %v1495_v61 = vld [vmem:[%s5090_s28 + $0x20] sm:$0xff] }
 0x1de   : > { %v1490_v15 = vsel %vm1488_vm5, %v1489_v14, %v1487_v13  ;;  %v1499_v10 = vld [vmem:[%s5090_s28 + $0x40] sm:$0xff]  ;;  %v1501_v14 = vld [vmem:[%s5090_s28 + $0x50] sm:$0xff] }
 0x1df   : > { %1545 = vrot.lane.b32.xlu1 %v1462_v5, %s4598_s19 }
 0x1e0   : > { %1547 = vrot.lane.b32.xlu0 %v1469_v6, %s4598_s19  ;;  %v1498_v6 = vld [vmem:[%s5090_s28 + $0x38] sm:$0xff] }
 0x1e3   : > { %1549 = vrot.lane.b32.xlu1 %v1476_v11, %s4598_s19  ;;  %v1500_v11 = vld [vmem:[%s5090_s28 + $0x48] sm:$0xff] }
 0x1e4   : > { %1551 = vrot.lane.b32.xlu0 %v1483_v12, %s4598_s19 }
 0x1e7   : > { %1553 = vrot.lane.b32.xlu1 %v1490_v15, %s4598_s19  ;;  %s5959_s19 = scalar_lea.vmem [#allocation2], %s3687_s4  ;;  %s4524_s4 = scalar_lea.vmem %s4523_s3, 2048 }
 0x1e8   : > { %2285 = vperm.xlu0 %4286, %v2266_v2   ;;  %v1502_v2 = vld [vmem:[%s5090_s28 + $0x58] sm:$0xff]  ;;  %s3549_s17 = sshll.u32 %s5959_s19, 4  ;;  %s5974_s17 = int_to_ptr.vmem [resolvable:$true] %s3549_s17 }
 0x1e9   : > { %s4518_s29 = scalar_lea.vmem %s5974_s17, 1024  ;;  %p4525_p1 = scmp.lt.s32.totalorder %s5974_s17, %s4523_s3 }
 0x1ea   : > { %p4519_p12 = scmp.ne.s32.totalorder %s5974_s17, %s4518_s29  ;;  %p4526_p2 = scmp.lt.s32.totalorder %s4524_s4, %s4518_s29 }
 0x1eb   : > { %2288 = vperm.xlu1 %4287, %v2267_v56  }
 0x1ec   : > { %2294 = vperm.xlu0 %4286, %v2269_v17   ;;  %p4520_p13 = pnand %p4519_p12, %p4728_p4  ;;  %p4527_p3 = por %p4526_p2, %p4525_p1 }
 0x1ee   : > { %p4521_p0 = pneg %p4520_p13 }
 0x1ef   : > { %2291 = vperm.xlu1 %4287, %v2268_v9  }
 0x1f0   : > { %2300 = vperm.xlu0 %4286, %v2271_v20   ;;  %p4528_p5 = pnand %p4527_p3, %p4521_p0 }
 0x1f3   : > { %2297 = vperm.xlu1 %4287, %v2270_v19  }
 0x1f4   : > { %2306 = vperm.xlu0 %4286, %v2273_v22  }
 0x1f7   : > { %2303 = vperm.xlu1 %4287, %v2272_v21   ;;  %v1504_v21 = vld [vmem:[%s5090_s28 + $0x68] sm:$0xff] }
 0x1f8   : > { %2312 = vperm.xlu0 %4286, %v2275_v24   ;;  %v1505_v24 = vld [vmem:[%s5090_s28 + $0x70] sm:$0xff] }
 0x1fb   : > { %2309 = vperm.xlu1 %4287, %v2274_v23  }
 0x1fc   : > { %2318 = vperm.xlu0 %4286, %v2277_v26  }
 0x1ff   : > { %2315 = vperm.xlu1 %4287, %v2276_v25  }
 0x200   : > { %2324 = vperm.xlu0 %4286, %v2279_v29  }
 0x203   : > { %2321 = vperm.xlu1 %4287, %v2278_v27   ;;  %v1506_v27 = vld [vmem:[%s5090_s28 + $0x78] sm:$0xff]  ;;  %s3883_s28 = sshll.u32 %s4586_s24, 10  ;;  %s5980_s24 = scalar_lea.sflag [#allocation3], %s615_s25 }
 0x204   : > { %2330 = vperm.xlu0 %4286, %v2281_v31   ;;  %v4299_v31 = vld [vmem:[%s6036_s11 + $0xb0] sm:$0xff]   ;;  %s5972_s27 = scalar_lea.hbm %s6041_s16, %s3883_s28 }
 0x207   : > { %2327 = vperm.xlu1 %4287, %v2280_v30   ;;  %v4298_v30 = vld [vmem:[%s6036_s11 + $0x18] sm:$0xff]  }
 0x239   : > { %v1524_v36 = vpop.permute.xlu0 %1523 }
 0x23a   : > { %v1572_v28 = vsel %vm1571_vm6, %v1491_v32, %v1524_v36  ;;  %v4300_v32 = vld [vmem:[%s6036_s11 + $0xa8] sm:$0xff]   ;;  %v4301_v36 = vld [vmem:[%s6036_s11 + $0x50] sm:$0xff]  }
 0x23b   : > { %3734 = vmatmul.mubr.msk.f32.vlgmr.msra.gmra.mxu1 %vm1626_vm7, %v1572_v28  ;;  %3752 = vmatmul.mubr.msk.f32.vlgmr.msra.gmra.mxu0 %vm1626_vm7, %v1572_v28  ;;  %v4304_v28 = vld [vmem:[%s6036_s11 + $0x98] sm:$0xff]  }
 0x23c   : > { %1758 = vmatprep.mubr.f32.mxu1 %v4597_v34  ;;  %1919 = vmatprep.mubr.f32.mxu0 %v4597_v34 }
 0x23d   : > { %v1526_v40 = vpop.permute.xlu0 %1525  ;;  %v1528_v38 = vpop.permute.xlu1 %1527  ;;  %3979 = vmatpush3.bf16.msra.mxu1 %v4289_v39  ;;  %2752 = vmatpush1.bf16.msra.mxu0 %v4296_v41  ;;  %v4303_v39 = vld [vmem:[%s6036_s11 + $0xa0] sm:$0xff]   ;;  %v4302_v41 = vld [vmem:[%s6036_s11 + $0x10] sm:$0xff]  }
 0x23e   : > { %v1573_v46 = vsel %vm1571_vm6, %v1492_v43, %v1526_v40  ;;  %3980 = vmatprep.subr.bf16.mxu1 %v4290_v42  ;;  %2753 = vmatprep.subr.bf16.mxu0 %v4599_v16  ;;  %v1574_v53 = vsel %vm1571_vm6, %v1493_v51, %v1528_v38  ;;  %v4307_v42 = vld [vmem:[%s6036_s11 + $0x90] sm:$0xff]   ;;  %v4305_v43 = vld [vmem:[%s6036_s11 + $0x48] sm:$0xff]   ;;  %v4312_v51 = vld [vmem:[%s6036_s11 + $0xc0] sm:$0xff]  }
 0x23f   : > { %3735 = vmatmul.mubr.msk.f32.gmra.mxu1 %vm1626_vm7, %v1573_v46  ;;  %3753 = vmatmul.mubr.msk.f32.gmra.mxu0 %vm1626_vm7, %v1573_v46  ;;  %v4306_v40 = vld [vmem:[%s6036_s11 + $0x8] sm:$0xff]   ;;  %v4309_v46 = vld [vmem:[%s6036_s11 + $0x40] sm:$0xff]  }
 0x240   : > { %1764 = vmatprep.mubr.f32.mxu1 %v4597_v34  ;;  %1925 = vmatprep.mubr.f32.mxu0 %v4597_v34  ;;  %v4308_v38 = vld [vmem:[%s6036_s11 + $0x88] sm:$0xff]  }
 0x241   : > { %3981 = vmatpush3.bf16.msra.mxu1 %v4291_v45  ;;  %v1530_v54 = vpop.permute.xlu1 %1529  ;;  %v1532_v60 = vpop.permute.xlu0 %1531  ;;  %2754 = vmatpush1.bf16.msra.mxu0 %v4299_v31  ;;  %v4311_v45 = vld [vmem:[%s6036_s11 + $0x80] sm:$0xff]  }
 0x242   : > { %3982 = vmatprep.subr.bf16.mxu1 %v4292_v48  ;;  %v1575_v58 = vsel %vm1571_vm6, %v1494_v55, %v1530_v54  ;;  %v1576_v62 = vsel %vm1571_vm6, %v1495_v61, %v1532_v60  ;;  %2755 = vmatprep.subr.bf16.mxu0 %v4599_v16  ;;  %v4310_v48 = vld [vmem:[%s6036_s11] sm:$0xff]   ;;  %v1620_v54 = vsub.s32 3, %v4830_v35 }
 0x243   : > { %3736 = vmatmul.mubr.msk.f32.gmra.mxu1 %vm1626_vm7, %v1574_v53  ;;  %3754 = vmatmul.mubr.msk.f32.gmra.mxu0 %vm1626_vm7, %v1574_v53  ;;  %v1604_v53 = vld [vmem:[%s6033_s8] sm:$0xf] }
 0x244   : > { %1770 = vmatprep.mubr.f32.mxu1 %v4597_v34  ;;  %1931 = vmatprep.mubr.f32.mxu0 %v4597_v34  ;;  %v5280_v55 = vrot.slane %v1604_v53, %v4834_v47 }
 0x245   : > { %3983 = vmatpush3.bf16.msra.mxu1 %v4293_v52  ;;  %v1534_v63 = vpop.permute.xlu1 %1533  ;;  %v1536_v3 = vpop.permute.xlu0 %1535  ;;  %2756 = vmatpush1.bf16.msra.mxu0 %v4300_v32  ;;  %v5269_v52 = vld [vmem:[%s6034_s9 + $0x20] ss:$0 sps:$4 sm:$0x11]  }
 0x246   : > { %3984 = vmatprep.subr.bf16.mxu1 %v4294_v37  ;;  %v1577_v0 = vsel %vm1571_vm6, %v1496_v44, %v1534_v63  ;;  %v1578_v4 = vsel %vm1571_vm6, %v1497_v1, %v1536_v3  ;;  %2757 = vmatprep.subr.bf16.mxu0 %v4599_v16  ;;  %v1612_v37 = vsub.s32 1, %v4830_v35 }
 0x247   : > { %3737 = vmatmul.mubr.msk.f32.gmra.mxu1 %vm1626_vm7, %v1575_v58  ;;  %3755 = vmatmul.mubr.msk.f32.gmra.mxu0 %vm1626_vm7, %v1575_v58 }
 0x248   : > { %1776 = vmatprep.mubr.f32.mxu1 %v4597_v34  ;;  %1937 = vmatprep.mubr.f32.mxu0 %v4597_v34  ;;  %v5284_v58 = vrot.slane %v1604_v53, %v1612_v37 }
 0x249   : > { %3985 = vmatpush3.bf16.msra.mxu1 %v4295_v49  ;;  %v1538_v5 = vpop.permute.xlu1 %1537  ;;  %2758 = vmatpush1.bf16.msra.mxu0 %v4303_v39 }
 0x24a   : > { %3986 = vmatprep.subr.bf16.mxu1 %v4297_v59  ;;  %v1579_v7 = vsel %vm1571_vm6, %v1498_v6, %v1538_v5  ;;  %v1540_v8 = vpop.permute.xlu0 %1539  ;;  %2759 = vmatprep.subr.bf16.mxu0 %v4599_v16  ;;  %v5286_v59 = vrot.slane %v1604_v53, %v1620_v54 }
 0x24b   : > { %3738 = vmatmul.mubr.msk.f32.gmra.mxu1 %vm1626_vm7, %v1576_v62  ;;  %3756 = vmatmul.mubr.msk.f32.gmra.mxu0 %vm1626_vm7, %v1576_v62  ;;  %v1580_v57 = vsel %vm1571_vm6, %v1499_v10, %v1540_v8 }
 0x24c   : > { %1782 = vmatprep.mubr.f32.mxu1 %v4597_v34  ;;  %1943 = vmatprep.mubr.f32.mxu0 %v4597_v34 }
 0x24d   : > { %v1542_v50 = vpop.permute.xlu1 %1541  ;;  %3987 = vmatpush3.bf16.msra.mxu1 %v4298_v30  ;;  %2760 = vmatpush1.bf16.msra.mxu0 %v4304_v28 }
 0x24e   : > { %v1581_v12 = vsel %vm1571_vm6, %v1500_v11, %v1542_v50  ;;  %v1544_v13 = vpop.permute.xlu0 %1543  ;;  %3988 = vmatprep.subr.bf16.mxu1 %v4301_v36  ;;  %2761 = vmatprep.subr.bf16.mxu0 %v4599_v16 }
 0x24f   : > { %3739 = vmatmul.mubr.msk.f32.gmra.mxu1 %vm1626_vm7, %v1577_v0  ;;  %3757 = vmatmul.mubr.msk.f32.gmra.mxu0 %vm1626_vm7, %v1577_v0  ;;  %v1582_v15 = vsel %vm1571_vm6, %v1501_v14, %v1544_v13 }
 0x250   : > { %1788 = vmatprep.mubr.f32.mxu1 %v4597_v34  ;;  %1949 = vmatprep.mubr.f32.mxu0 %v4597_v34 }
 0x251   : > { %v1546_v56 = vpop.permute.xlu1 %1545  ;;  %3989 = vmatpush3.bf16.msra.mxu1 %v4302_v41  ;;  %2762 = vmatpush1.bf16.msra.mxu0 %v4307_v42 }
 0x252   : > { %v1583_v9 = vsel %vm1571_vm6, %v1502_v2, %v1546_v56  ;;  %v1548_v17 = vpop.permute.xlu0 %1547  ;;  %3990 = vmatprep.subr.bf16.mxu1 %v4305_v43  ;;  %2763 = vmatprep.subr.bf16.mxu0 %v4599_v16 }
 0x253   : > { %3740 = vmatmul.mubr.msk.f32.gmra.mxu1 %vm1626_vm7, %v1578_v4  ;;  %3758 = vmatmul.mubr.msk.f32.gmra.mxu0 %vm1626_vm7, %v1578_v4  ;;  %v1584_v19 = vsel %vm1571_vm6, %v1503_v18, %v1548_v17 }
 0x254   : > { %1794 = vmatprep.mubr.f32.mxu1 %v4597_v34  ;;  %1955 = vmatprep.mubr.f32.mxu0 %v4597_v34 }
 0x255   : > { %v1550_v20 = vpop.permute.xlu1 %1549  ;;  %3991 = vmatpush3.bf16.msra.mxu1 %v4306_v40  ;;  %2764 = vmatpush1.bf16.msra.mxu0 %v4308_v38 }
 0x256   : > { %v1585_v22 = vsel %vm1571_vm6, %v1504_v21, %v1550_v20  ;;  %v1552_v23 = vpop.permute.xlu0 %1551  ;;  %2765 = vmatprep.subr.bf16.mxu0 %v4599_v16  ;;  %3992 = vmatprep.subr.bf16.mxu1 %v4309_v46 }
 0x257   : > { %3741 = vmatmul.mubr.msk.f32.gmra.mxu1 %vm1626_vm7, %v1579_v7  ;;  %3759 = vmatmul.mubr.msk.f32.gmra.mxu0 %vm1626_vm7, %v1579_v7  ;;  %v1586_v25 = vsel %vm1571_vm6, %v1505_v24, %v1552_v23 }
 0x258   : > { %1800 = vmatprep.mubr.f32.mxu1 %v4597_v34  ;;  %1961 = vmatprep.mubr.f32.mxu0 %v4597_v34 }
 0x259   : > { %v1554_v26 = vpop.permute.xlu1 %1553  ;;  %2766 = vmatpush1.bf16.msra.mxu0 %v4311_v45  ;;  %3993 = vmatpush3.bf16.msra.mxu1 %v4310_v48 }
 0x25a   : > { %v1587_v29 = vsel %vm1571_vm6, %v1506_v27, %v1554_v26  ;;  %2781 = vmatprep.subr.bf16.mxu0 %v4599_v16  ;;  %4224 = vmatprep.subr.msk.bf16.mxu1 %vm1675_vm3, %v5269_v52  ;;  %v1616_v16 = vsub.s32 2, %v4830_v35 }
 0x25b   : > { %3742 = vmatmul.mubr.msk.f32.gmra.mxu1 %vm1626_vm7, %v1580_v57  ;;  %3760 = vmatmul.mubr.msk.f32.gmra.mxu0 %vm1626_vm7, %v1580_v57 }
 0x25c   : > { %1806 = vmatprep.mubr.f32.mxu1 %v4597_v34  ;;  %1967 = vmatprep.mubr.f32.mxu0 %v4597_v34  ;;  %v5282_v49 = vrot.slane %v1604_v53, %v1616_v16 }
 0x25d   : > { %2782 = vmatpush2.bf16.msra.mxu0 %v4312_v51 }
 0x25f   : > { %3743 = vmatmul.mubr.msk.f32.gmra.mxu1 %vm1626_vm7, %v1581_v12  ;;  %3761 = vmatmul.mubr.msk.f32.gmra.mxu0 %vm1626_vm7, %v1581_v12 }
 0x260   : > { %1812 = vmatprep.mubr.f32.mxu1 %v4597_v34  ;;  %1973 = vmatprep.mubr.f32.mxu0 %v4597_v34 }
 0x263   : > { %3744 = vmatmul.mubr.msk.f32.gmra.mxu1 %vm1626_vm7, %v1582_v15  ;;  %3762 = vmatmul.mubr.msk.f32.gmra.mxu0 %vm1626_vm7, %v1582_v15 }
 0x264   : > { %1818 = vmatprep.mubr.f32.mxu1 %v4597_v34  ;;  %1979 = vmatprep.mubr.f32.mxu0 %v4597_v34 }
 0x267   : > { %3745 = vmatmul.mubr.msk.f32.gmra.mxu1 %vm1626_vm7, %v1583_v9  ;;  %3763 = vmatmul.mubr.msk.f32.gmra.mxu0 %vm1626_vm7, %v1583_v9 }
 0x268   : > { %1824 = vmatprep.mubr.f32.mxu1 %v4597_v34  ;;  %1985 = vmatprep.mubr.f32.mxu0 %v4597_v34 }
 0x26b   : > { %3746 = vmatmul.mubr.msk.f32.gmra.mxu1 %vm1626_vm7, %v1584_v19  ;;  %3764 = vmatmul.mubr.msk.f32.gmra.mxu0 %vm1626_vm7, %v1584_v19 }
 0x26c   : > { %1830 = vmatprep.mubr.f32.mxu1 %v4597_v34  ;;  %1991 = vmatprep.mubr.f32.mxu0 %v4597_v34 }
 0x26f   : > { %3747 = vmatmul.mubr.msk.f32.gmra.mxu1 %vm1626_vm7, %v1585_v22  ;;  %3765 = vmatmul.mubr.msk.f32.gmra.mxu0 %vm1626_vm7, %v1585_v22 }
 0x270   : > { %1836 = vmatprep.mubr.f32.mxu1 %v4597_v34  ;;  %1997 = vmatprep.mubr.f32.mxu0 %v4597_v34 }
 0x273   : > { %3748 = vmatmul.mubr.msk.f32.gmra.mxu1 %vm1626_vm7, %v1586_v25  ;;  %3766 = vmatmul.mubr.msk.f32.gmra.mxu0 %vm1626_vm7, %v1586_v25 }
 0x274   : > { %1842 = vmatprep.mubr.f32.mxu1 %v4597_v34  ;;  %2003 = vmatprep.mubr.f32.mxu0 %v4597_v34 }
 0x277   : > { %3749 = vmatmul.mubr.msk.f32.gmra.mxu1 %vm1626_vm7, %v1587_v29  ;;  %3767 = vmatmul.mubr.msk.f32.gmra.mxu0 %vm1626_vm7, %v1587_v29 }
 0x2fb   : > { %v1754_v60 = vpop.f32.mrf.mxu1  ;;  %v1915_v61 = vpop.f32.mrf.mxu0 }
 0x2fc   : > { %v1755_v62 = vadd.f32 %v1754_v60, %v5280_v55  ;;  %v1916_v63 = vadd.f32 %v1915_v61, %v5282_v49 }
 0x2fd   : > { %v1756_v44 = vpop.f32.mrf.mxu1  ;;  %v1917_v0 = vpop.f32.mrf.mxu0 }
 0x2fe   : > { %v2010_v3 = vmul.f32 %v1755_v62, %v1755_v62  ;;  %v2012_v1 = vmul.f32 %v1916_v63, %v1916_v63  ;;  %v1757_v35 = vadd.f32 %v1756_v44, %v5284_v58  ;;  %v1918_v47 = vadd.f32 %v1917_v0, %v5286_v59 }
 0x2ff   : > { %v1760_v4 = vpop.f32.mrf.mxu1  ;;  %v1921_v5 = vpop.f32.mrf.mxu0 }
 0x300   : > { %v2074_v6 = vsub.f32 0.0, %v2010_v3  ;;  %v2076_v7 = vsub.f32 0.0, %v2012_v1  ;;  %v2011_v8 = vmul.f32 %v1757_v35, %v1757_v35  ;;  %v2013_v10 = vmul.f32 %v1918_v47, %v1918_v47 }
 0x301   : > { %v1761_v57 = vadd.f32 %v1760_v4, %v5280_v55  ;;  %v1922_v50 = vadd.f32 %v1921_v5, %v5282_v49  ;;  %v1762_v11 = vpop.f32.mrf.mxu1  ;;  %v1923_v12 = vpop.f32.mrf.mxu0 }
 0x302   : > { %v2138_v13 = vmul.f32 1.442695, %v2074_v6  ;;  %v2142_v14 = vmul.f32 1.442695, %v2076_v7  ;;  %v2075_v15 = vsub.f32 0.0, %v2011_v8  ;;  %v2077_v56 = vsub.f32 0.0, %v2013_v10 }
 0x303   : > { %v2014_v2 = vmul.f32 %v1761_v57, %v1761_v57  ;;  %v2016_v9 = vmul.f32 %v1922_v50, %v1922_v50  ;;  %v1763_v17 = vadd.f32 %v1762_v11, %v5284_v58  ;;  %v1924_v18 = vadd.f32 %v1923_v12, %v5286_v59  ;;  %v1766_v19 = vpop.f32.mrf.mxu1  ;;  %v1927_v20 = vpop.f32.mrf.mxu0 }
 0x304   : > { %4358 = vpow2.f32 %v2138_v13  ;;  %v2140_v21 = vmul.f32 1.442695, %v2075_v15  ;;  %v2144_v22 = vmul.f32 1.442695, %v2077_v56  ;;  %v1767_v23 = vadd.f32 %v1766_v19, %v5280_v55 }
 0x305   : > { %4360 = vpow2.f32 %v2142_v14  ;;  %v2078_v24 = vsub.f32 0.0, %v2014_v2  ;;  %v2080_v25 = vsub.f32 0.0, %v2016_v9  ;;  %v2015_v26 = vmul.f32 %v1763_v17, %v1763_v17  ;;  %v1768_v27 = vpop.f32.mrf.mxu1  ;;  %v1929_v29 = vpop.f32.mrf.mxu0 }
 0x306   : > { %4362 = vpow2.f32 %v2140_v21  ;;  %v2017_v30 = vmul.f32 %v1924_v18, %v1924_v18  ;;  %v2018_v31 = vmul.f32 %v1767_v23, %v1767_v23  ;;  %v1928_v32 = vadd.f32 %v1927_v20, %v5282_v49 }
 0x307   : > { %4364 = vpow2.f32 %v2144_v22  ;;  %v2146_v36 = vmul.f32 1.442695, %v2078_v24  ;;  %v2150_v39 = vmul.f32 1.442695, %v2080_v25  ;;  %v2079_v41 = vsub.f32 0.0, %v2015_v26  ;;  %v1772_v28 = vpop.f32.mrf.mxu1  ;;  %v1933_v42 = vpop.f32.mrf.mxu0 }
 0x308   : > { %v2081_v43 = vsub.f32 0.0, %v2017_v30  ;;  %v2082_v40 = vsub.f32 0.0, %v2018_v31  ;;  %v2020_v38 = vmul.f32 %v1928_v32, %v1928_v32  ;;  %v1769_v45 = vadd.f32 %v1768_v27, %v5284_v58 }
 0x309   : > { %4366 = vpow2.f32 %v2146_v36  ;;  %v2148_v46 = vmul.f32 1.442695, %v2079_v41  ;;  %v1930_v48 = vadd.f32 %v1929_v29, %v5286_v59  ;;  %v1773_v51 = vadd.f32 %v1772_v28, %v5280_v55  ;;  %v1774_v16 = vpop.f32.mrf.mxu1  ;;  %v1935_v53 = vpop.f32.mrf.mxu0 }
 0x30a   : > { %4368 = vpow2.f32 %v2150_v39  ;;  %v2152_v37 = vmul.f32 1.442695, %v2081_v43  ;;  %v2154_v54 = vmul.f32 1.442695, %v2082_v40  ;;  %v2084_v60 = vsub.f32 0.0, %v2020_v38 }
 0x30b   : > { %4370 = vpow2.f32 %v2148_v46  ;;  %v2019_v61 = vmul.f32 %v1769_v45, %v1769_v45  ;;  %v2021_v62 = vmul.f32 %v1930_v48, %v1930_v48  ;;  %v2022_v63 = vmul.f32 %v1773_v51, %v1773_v51  ;;  %v1778_v44 = vpop.f32.mrf.mxu1  ;;  %v1939_v0 = vpop.f32.mrf.mxu0 }
 0x30c   : > { %4372 = vpow2.f32 %v2152_v37  ;;  %v2158_v3 = vmul.f32 1.442695, %v2084_v60  ;;  %v1934_v1 = vadd.f32 %v1933_v42, %v5282_v49  ;;  %v1775_v35 = vadd.f32 %v1774_v16, %v5284_v58 }
 0x30d   : > { %4374 = vpow2.f32 %v2154_v54  ;;  %v2083_v47 = vsub.f32 0.0, %v2019_v61  ;;  %v2085_v4 = vsub.f32 0.0, %v2021_v62  ;;  %v2086_v5 = vsub.f32 0.0, %v2022_v63  ;;  %v1780_v6 = vpop.f32.mrf.mxu1  ;;  %v1941_v7 = vpop.f32.mrf.mxu0 }
 0x30e   : > { %4376 = vpow2.f32 %v2158_v3  ;;  %v2024_v8 = vmul.f32 %v1934_v1, %v1934_v1  ;;  %v2023_v10 = vmul.f32 %v1775_v35, %v1775_v35  ;;  %v1936_v57 = vadd.f32 %v1935_v53, %v5286_v59 }
 0x30f   : > { %v2156_v50 = vmul.f32 1.442695, %v2083_v47  ;;  %v2160_v11 = vmul.f32 1.442695, %v2085_v4  ;;  %v2162_v12 = vmul.f32 1.442695, %v2086_v5  ;;  %v1779_v13 = vadd.f32 %v1778_v44, %v5280_v55  ;;  %v1784_v14 = vpop.f32.mrf.mxu1  ;;  %v1945_v15 = vpop.f32.mrf.mxu0 }
 0x310   : > { %v2088_v56 = vsub.f32 0.0, %v2024_v8  ;;  %v2087_v2 = vsub.f32 0.0, %v2023_v10  ;;  %v2025_v9 = vmul.f32 %v1936_v57, %v1936_v57  ;;  %v1940_v17 = vadd.f32 %v1939_v0, %v5282_v49 }
 0x311   : > { %v5306_v18 = vpop.eup %4358  ;;  %4378 = vpow2.f32 %v2156_v50  ;;  %v2026_v19 = vmul.f32 %v1779_v13, %v1779_v13  ;;  %v1781_v20 = vadd.f32 %v1780_v6, %v5284_v58  ;;  %v1942_v21 = vadd.f32 %v1941_v7, %v5286_v59  ;;  %v1786_v22 = vpop.f32.mrf.mxu1 }
 0x312   : > { %v1947_v23 = vpop.f32.mrf.mxu0  ;;  %v5310_v24 = vpop.eup %4360  ;;  %4380 = vpow2.f32 %v2160_v11  ;;  %v2166_v25 = vmul.f32 1.442695, %v2088_v56  ;;  %v2164_v26 = vmul.f32 1.442695, %v2087_v2  ;;  %v2089_v27 = vsub.f32 0.0, %v2025_v9 }
 0x313   : > { %v5312_v29 = vpop.eup %4362  ;;  %4382 = vpow2.f32 %v2162_v12  ;;  %v2090_v30 = vsub.f32 0.0, %v2026_v19  ;;  %v2028_v31 = vmul.f32 %v1940_v17, %v1940_v17  ;;  %v2027_v32 = vmul.f32 %v1781_v20, %v1781_v20  ;;  %v1790_v36 = vpop.f32.mrf.mxu1 }
 0x314   : > { %v1951_v39 = vpop.f32.mrf.mxu0  ;;  %v5314_v41 = vpop.eup %4364  ;;  %4384 = vpow2.f32 %v2166_v25  ;;  %v2168_v28 = vmul.f32 1.442695, %v2089_v27  ;;  %v2029_v42 = vmul.f32 %v1942_v21, %v1942_v21  ;;  %v1785_v43 = vadd.f32 %v1784_v14, %v5280_v55 }
 0x315   : > { %4386 = vpow2.f32 %v2164_v26  ;;  %v2170_v40 = vmul.f32 1.442695, %v2090_v30  ;;  %v2092_v38 = vsub.f32 0.0, %v2028_v31  ;;  %v2091_v45 = vsub.f32 0.0, %v2027_v32  ;;  %v1792_v46 = vpop.f32.mrf.mxu1 }
 0x316   : > { %v1953_v48 = vpop.f32.mrf.mxu0  ;;  %v5317_v51 = vpop.eup %4366  ;;  %4388 = vpow2.f32 %v2168_v28  ;;  %v2093_v16 = vsub.f32 0.0, %v2029_v42  ;;  %v2030_v53 = vmul.f32 %v1785_v43, %v1785_v43  ;;  %v1946_v37 = vadd.f32 %v1945_v15, %v5282_v49 }
 0x317   : > { %v5320_v54 = vpop.eup %4368  ;;  %4390 = vpow2.f32 %v2170_v40  ;;  %v2174_v60 = vmul.f32 1.442695, %v2092_v38  ;;  %v2172_v61 = vmul.f32 1.442695, %v2091_v45  ;;  %v1787_v62 = vadd.f32 %v1786_v22, %v5284_v58  ;;  %v1796_v63 = vpop.f32.mrf.mxu1 }
 0x318   : > { %v1957_v44 = vpop.f32.mrf.mxu0  ;;  %v5323_v0 = vpop.eup %4370  ;;  %v2176_v3 = vmul.f32 1.442695, %v2093_v16  ;;  %v2094_v1 = vsub.f32 0.0, %v2030_v53  ;;  %v2032_v35 = vmul.f32 %v1946_v37, %v1946_v37  ;;  %v1948_v47 = vadd.f32 %v1947_v23, %v5286_v59 }
 0x319   : > { %v5326_v4 = vpop.eup %4372  ;;  %4392 = vpow2.f32 %v2174_v60  ;;  %v2031_v5 = vmul.f32 %v1787_v62, %v1787_v62  ;;  %v1791_v6 = vadd.f32 %v1790_v36, %v5280_v55  ;;  %v1952_v7 = vadd.f32 %v1951_v39, %v5282_v49  ;;  %v1798_v8 = vpop.f32.mrf.mxu1 }
 0x31a   : > { %v1959_v10 = vpop.f32.mrf.mxu0  ;;  %v5330_v57 = vpop.eup %4374  ;;  %4394 = vpow2.f32 %v2172_v61  ;;  %v2178_v50 = vmul.f32 1.442695, %v2094_v1  ;;  %v2096_v11 = vsub.f32 0.0, %v2032_v35  ;;  %v2033_v12 = vmul.f32 %v1948_v47, %v1948_v47 }
 0x31b   : > { %v5332_v13 = vpop.eup %4376  ;;  %4396 = vpow2.f32 %v2176_v3  ;;  %v2095_v14 = vsub.f32 0.0, %v2031_v5  ;;  %v2034_v15 = vmul.f32 %v1791_v6, %v1791_v6  ;;  %v2036_v56 = vmul.f32 %v1952_v7, %v1952_v7  ;;  %v1802_v2 = vpop.f32.mrf.mxu1 }
 0x31c   : > { %v5334_v9 = vpop.f32.mrf.mxu0  ;;  %4398 = vpow2.f32 %v2178_v50  ;;  %v2182_v17 = vmul.f32 1.442695, %v2096_v11  ;;  %v2097_v19 = vsub.f32 0.0, %v2033_v12  ;;  %v1793_v20 = vadd.f32 %v1792_v46, %v5284_v58 }
 0x31d   : > { %v2180_v21 = vmul.f32 1.442695, %v2095_v14  ;;  %v2098_v22 = vsub.f32 0.0, %v2034_v15  ;;  %v2100_v23 = vsub.f32 0.0, %v2036_v56  ;;  %v1954_v25 = vadd.f32 %v1953_v48, %v5286_v59  ;;  %v5338_v26 = vpop.f32.mrf.mxu1 }
 0x31e   : > { %v5340_v27 = vpop.f32.mrf.mxu0  ;;  %v5342_v30 = vpop.eup %4378  ;;  %4400 = vpow2.f32 %v2182_v17  ;;  %v2184_v31 = vmul.f32 1.442695, %v2097_v19  ;;  %v2035_v32 = vmul.f32 %v1793_v20, %v1793_v20  ;;  %v1797_v36 = vadd.f32 %v1796_v63, %v5280_v55 }
 0x31f   : > { %v5345_v39 = vpop.eup %4380  ;;  %4402 = vpow2.f32 %v2180_v21  ;;  %v2186_v28 = vmul.f32 1.442695, %v2098_v22  ;;  %v2037_v42 = vmul.f32 %v1954_v25, %v1954_v25  ;;  %v2901_v43 = vsel %vm1675_vm3, %v5269_v52, 0  ;;  %v1808_v40 = vpop.f32.mrf.mxu1 }
 0x320   : > { %v1969_v38 = vpop.f32.mrf.mxu0  ;;  %v5349_v45 = vpop.eup %4382  ;;  %v2190_v46 = vmul.f32 1.442695, %v2100_v23  ;;  %v2099_v48 = vsub.f32 0.0, %v2035_v32  ;;  %v2038_v16 = vmul.f32 %v1797_v36, %v1797_v36  ;;  %v1958_v53 = vadd.f32 %v1957_v44, %v5282_v49 }
 0x321   : > { %v5352_v37 = vpop.eup %4384  ;;  %4404 = vpow2.f32 %v2184_v31  ;;  %v2101_v60 = vsub.f32 0.0, %v2037_v42  ;;  %v1799_v61 = vadd.f32 %v1798_v8, %v5284_v58  ;;  %v1960_v62 = vadd.f32 %v1959_v10, %v5286_v59  ;;  %v5356_v63 = vpop.f32.mrf.mxu1 }
 0x322   : > { %v5358_v52 = vpop.f32.mrf.mxu0  ;;  %v5360_v3 = vpop.eup %4386  ;;  %4406 = vpow2.f32 %v2186_v28  ;;  %v2188_v1 = vmul.f32 1.442695, %v2099_v48  ;;  %v2102_v35 = vsub.f32 0.0, %v2038_v16  ;;  %v2040_v47 = vmul.f32 %v1958_v53, %v1958_v53 }
 0x323   : > { %v5362_v5 = vpop.eup %4388  ;;  %v2192_v44 = vmul.f32 1.442695, %v2101_v60  ;;  %v2039_v6 = vmul.f32 %v1799_v61, %v1799_v61  ;;  %v2041_v7 = vmul.f32 %v1960_v62, %v1960_v62  ;;  %v2398_v8 = vpack.c.bf16 %v5323_v0, %v5312_v29  ;;  %v5366_v50 = vpop.f32.mrf.mxu1 }
 0x324   : > { %v5368_v10 = vpop.f32.mrf.mxu0  ;;  %v5370_v11 = vpop.eup %4390  ;;  %4408 = vpow2.f32 %v2190_v46  ;;  %v2194_v12 = vmul.f32 1.442695, %v2102_v35  ;;  %v2104_v14 = vsub.f32 0.0, %v2040_v47  ;;  %v2400_v15 = vpack.c.bf16 %v5326_v4, %v5314_v41  ;;  %v4314_v4 = vld [vmem:[%s6034_s9 + $0x18] sm:$0xff]  }
 0x325   : > { %4410 = vpow2.f32 %v2188_v1  ;;  %v2103_v56 = vsub.f32 0.0, %v2039_v6  ;;  %v2105_v17 = vsub.f32 0.0, %v2041_v7  ;;  %2686 = vmatprep.mubr.bf16.mxu1 %v2398_v8  ;;  %v1803_v19 = vadd.f32 %v1802_v2, %v5280_v55  ;;  %v5375_v20 = vpop.f32.mrf.mxu1 }
 0x326   : > { %v5377_v29 = vpop.f32.mrf.mxu0  ;;  %v5379_v0 = vpop.eup %4392  ;;  %4412 = vpow2.f32 %v2192_v44  ;;  %v2198_v21 = vmul.f32 1.442695, %v2104_v14  ;;  %3809 = vmatprep.mubr.msk.bf16.mxu0 %vm2629_vm8, %v2400_v15  ;;  %v1964_v22 = vadd.f32 %v5334_v9, %v5282_v49  ;;  %v2397_v41 = vpack.c.bf16 %v5317_v51, %v5306_v18 }
 0x327   : > { %v5389_v2 = vpop.eup %4394  ;;  %4414 = vpow2.f32 %v2194_v12  ;;  %v2042_v23 = vmul.f32 %v1803_v19, %v1803_v19  ;;  %v2399_v25 = vpack.c.bf16 %v5320_v54, %v5310_v24  ;;  %v5393_v31 = vpop.f32.mrf.mxu1  ;;  %v2196_v9 = vmul.f32 1.442695, %v2103_v56 }
 0x328   : > { %v5395_v32 = vpop.f32.mrf.mxu0  ;;  %v5397_v36 = vpop.eup %4396  ;;  %v2044_v28 = vmul.f32 %v1964_v22, %v1964_v22  ;;  %2687 = vmatmul.mubr.bf16.vlgmr.msra.gmra.mxu1 %v2397_v41  ;;  %v1805_v18 = vadd.f32 %v5338_v26, %v5284_v58  ;;  %v1966_v51 = vadd.f32 %v5340_v27, %v5286_v59  ;;  %v2200_v46 = vmul.f32 1.442695, %v2105_v17  ;;  %v4315_v27 = vld [vmem:[%s6034_s9 + $0x10] sm:$0xff]  }
 0x329   : > { %v5403_v42 = vpop.eup %4398  ;;  %v2106_v48 = vsub.f32 0.0, %v2042_v23  ;;  %2784 = vmatmul.mubr.bf16.vlgmr.msra.gmra.mxu0 %v2399_v25  ;;  %4149 = vmatpush3.bf16.msra.mxu1 %v2901_v43  ;;  %v1809_v24 = vadd.f32 %v1808_v40, %v5280_v55  ;;  %v1970_v54 = vadd.f32 %v1969_v38, %v5282_v49  ;;  %v5407_v16 = vpop.f32.mrf.mxu1  ;;  %4416 = vpow2.f32 %v2198_v21  ;;  %v4316_v21 = vld [vmem:[%s6034_s9 + $0x8] sm:$0xff]  }
 0x32a   : > { %v2108_v53 = vsub.f32 0.0, %v2044_v28  ;;  %v2043_v60 = vmul.f32 %v1805_v18, %v1805_v18  ;;  %v2045_v61 = vmul.f32 %v1966_v51, %v1966_v51  ;;  %4150 = vmatprep.subr.bf16.mxu1 %v4314_v4  ;;  %v5409_v26 = vpop.f32.mrf.mxu0  ;;  %v1811_v38 = vadd.f32 %v5356_v63, %v5284_v58 }
 0x32b   : > { %v5414_v62 = vpop.eup %4400  ;;  %v2202_v43 = vmul.f32 1.442695, %v2106_v48  ;;  %v2046_v1 = vmul.f32 %v1809_v24, %v1809_v24  ;;  %v2048_v40 = vmul.f32 %v1970_v54, %v1970_v54  ;;  %v1972_v7 = vadd.f32 %v5358_v52, %v5286_v59  ;;  %v5422_v14 = vpop.f32.mrf.mxu1 }
 0x32c   : > { %v5418_v35 = vpop.eup %4402  ;;  %v2206_v47 = vmul.f32 1.442695, %v2108_v53  ;;  %v2107_v44 = vsub.f32 0.0, %v2043_v60  ;;  %v2109_v6 = vsub.f32 0.0, %v2045_v61  ;;  %4418 = vpow2.f32 %v2196_v9  ;;  %v5426_v19 = vpop.f32.mrf.mxu0 }
 0x32d   : > { %v2110_v8 = vsub.f32 0.0, %v2046_v1  ;;  %v2047_v12 = vmul.f32 %v1811_v38, %v1811_v38  ;;  %4151 = vmatpush3.bf16.msra.mxu1 %v4314_v4  ;;  %4420 = vpow2.f32 %v2200_v46  ;;  %v2112_v17 = vsub.f32 0.0, %v2048_v40 }
 0x32e   : > { %v5424_v15 = vpop.eup %4404  ;;  %v2204_v56 = vmul.f32 1.442695, %v2107_v44  ;;  %v2049_v63 = vmul.f32 %v1972_v7, %v1972_v7  ;;  %4152 = vmatprep.subr.bf16.mxu1 %v4315_v27  ;;  %4422 = vpow2.f32 %v2202_v43  ;;  %v2208_v22 = vmul.f32 1.442695, %v2109_v6  ;;  %v5452_v48 = vpop.f32.mrf.mxu0 }
 0x32f   : > { %v5431_v52 = vpop.eup %4406  ;;  %v2402_v41 = vpack.c.bf16 %v5360_v3, %v5342_v30  ;;  %4424 = vpow2.f32 %v2206_v47  ;;  %v2111_v4 = vsub.f32 0.0, %v2047_v12  ;;  %v2404_v23 = vpack.c.bf16 %v5362_v5, %v5345_v39  ;;  %v5445_v30 = vpop.f32.mrf.mxu1 }
 0x330   : > { %v1815_v25 = vadd.f32 %v5366_v50, %v5280_v55  ;;  %v2210_v28 = vmul.f32 1.442695, %v2110_v8  ;;  %v2113_v18 = vsub.f32 0.0, %v2049_v63  ;;  %v1976_v51 = vadd.f32 %v5368_v10, %v5282_v49  ;;  %v1993_v47 = vpop.f32.mrf.mxu0 }
 0x331   : > { %v5439_v9 = vpop.eup %4408  ;;  %2694 = vmatprep.mubr.bf16.mxu1 %v2402_v41  ;;  %v2401_v46 = vpack.c.bf16 %v5349_v45, %v5330_v57  ;;  %4153 = vmatpush3.bf16.msra.mxu1 %v4315_v27  ;;  %4426 = vpow2.f32 %v2204_v56  ;;  %v2214_v39 = vmul.f32 1.442695, %v2112_v17  ;;  %v2403_v50 = vpack.c.bf16 %v5352_v37, %v5332_v13  ;;  %v4317_v57 = vld [vmem:[%s6034_s9] sm:$0xff]   ;;  %v1832_v38 = vpop.f32.mrf.mxu1 }
 0x332   : > { %v5447_v3 = vpop.eup %4410  ;;  %3810 = vmatprep.mubr.msk.bf16.mxu0 %vm2629_vm8, %v2404_v23  ;;  %v2050_v5 = vmul.f32 %v1815_v25, %v1815_v25  ;;  %4154 = vmatprep.subr.bf16.mxu1 %v4316_v21  ;;  %4428 = vpow2.f32 %v2208_v22  ;;  %v2052_v10 = vmul.f32 %v1976_v51, %v1976_v51  ;;  %v1817_v24 = vadd.f32 %v5375_v20, %v5284_v58  ;;  %v1995_v23 = vpop.f32.mrf.mxu0 }
 0x333   : > { %v5457_v45 = vpop.eup %4412  ;;  %2695 = vmatmul.mubr.bf16.gmra.mxu1 %v2401_v46  ;;  %v1978_v54 = vadd.f32 %v5377_v29, %v5286_v59  ;;  %v2212_v13 = vmul.f32 1.442695, %v2111_v4  ;;  %2792 = vmatmul.mubr.bf16.gmra.mxu0 %v2403_v50  ;;  %v1821_v60 = vadd.f32 %v5393_v31, %v5280_v55  ;;  %v1982_v61 = vadd.f32 %v5395_v32, %v5282_v49  ;;  %v1834_v63 = vpop.f32.mrf.mxu1 }
 0x334   : > { %v5463_v53 = vpop.eup %4414  ;;  %v2114_v37 = vsub.f32 0.0, %v2050_v5  ;;  %v2216_v27 = vmul.f32 1.442695, %v2113_v18  ;;  %v2116_v43 = vsub.f32 0.0, %v2052_v10  ;;  %v2051_v1 = vmul.f32 %v1817_v24, %v1817_v24 }
 0x335   : > { %v2053_v40 = vmul.f32 %v1978_v54, %v1978_v54  ;;  %4155 = vmatpush3.bf16.msra.mxu1 %v4316_v21  ;;  %4430 = vpow2.f32 %v2210_v28  ;;  %v2054_v20 = vmul.f32 %v1821_v60, %v1821_v60  ;;  %v1823_v29 = vadd.f32 %v5407_v16, %v5284_v58 }
 0x336   : > { %4156 = vmatprep.subr.bf16.mxu1 %v4317_v57  ;;  %v5471_v44 = vpop.eup %4416  ;;  %4432 = vpow2.f32 %v2214_v39  ;;  %v2218_v31 = vmul.f32 1.442695, %v2114_v37  ;;  %v2115_v6 = vsub.f32 0.0, %v2051_v1  ;;  %v1984_v32 = vadd.f32 %v5409_v26, %v5286_v59 }
 0x337   : > { %4434 = vpow2.f32 %v2212_v13  ;;  %v2117_v7 = vsub.f32 0.0, %v2053_v40  ;;  %v2056_v8 = vmul.f32 %v1982_v61, %v1982_v61  ;;  %v2055_v12 = vmul.f32 %v1823_v29, %v1823_v29 }
 0x338   : > { %4436 = vpow2.f32 %v2216_v27  ;;  %v2222_v56 = vmul.f32 1.442695, %v2116_v43  ;;  %v2057_v17 = vmul.f32 %v1984_v32, %v1984_v32  ;;  %v2220_v21 = vmul.f32 1.442695, %v2115_v6 }
 0x339   : > { %4157 = vmatpush3.bf16.msra.mxu1 %v4317_v57  ;;  %v5475_v16 = vpop.eup %4418  ;;  %v2118_v22 = vsub.f32 0.0, %v2054_v20  ;;  %v2119_v41 = vsub.f32 0.0, %v2055_v12  ;;  %v2406_v4 = vpack.c.bf16 %v5418_v35, %v5389_v2  ;;  %4438 = vpow2.f32 %v2218_v31 }
 0x33a   : > { %v5479_v25 = vpop.eup %4420  ;;  %v2121_v26 = vsub.f32 0.0, %v2057_v17  ;;  %v2408_v28 = vpack.c.bf16 %v5424_v15, %v5397_v36  ;;  %v1827_v18 = vadd.f32 %v5422_v14, %v5280_v55  ;;  %v2224_v46 = vmul.f32 1.442695, %v2117_v7  ;;  %v5496_v15 = vpop.f32.mrf.mxu1 }
 0x33b   : > { %v5485_v51 = vpop.eup %4422  ;;  %v2120_v39 = vsub.f32 0.0, %v2056_v8  ;;  %2702 = vmatprep.mubr.bf16.mxu1 %v2406_v4  ;;  %v1988_v5 = vadd.f32 %v5426_v19, %v5282_v49  ;;  %v2405_v2 = vpack.c.bf16 %v5403_v42, %v5370_v11  ;;  %4440 = vpow2.f32 %v2222_v56  ;;  %v5502_v42 = vpop.f32.mrf.mxu0 }
 0x33c   : > { %v5491_v35 = vpop.eup %4424  ;;  %v2228_v50 = vmul.f32 1.442695, %v2119_v41  ;;  %3811 = vmatprep.mubr.msk.bf16.mxu0 %vm2629_vm8, %v2408_v28  ;;  %v2058_v36 = vmul.f32 %v1827_v18, %v1827_v18  ;;  %v2407_v14 = vpack.c.bf16 %v5414_v62, %v5379_v0  ;;  %4442 = vpow2.f32 %v2220_v21  ;;  %v1840_v43 = vpop.f32.mrf.mxu1 }
 0x33d   : > { %v2226_v57 = vmul.f32 1.442695, %v2118_v22  ;;  %2703 = vmatmul.mubr.bf16.gmra.mxu1 %v2405_v2  ;;  %v1829_v19 = vadd.f32 %v5445_v30, %v5284_v58  ;;  %v1990_v11 = vadd.f32 %v5452_v48, %v5286_v59  ;;  %v2232_v24 = vmul.f32 1.442695, %v2121_v26 }
 0x33e   : > { %v5504_v10 = vpop.eup %4426  ;;  %v2122_v54 = vsub.f32 0.0, %v2058_v36  ;;  %2800 = vmatmul.mubr.bf16.gmra.mxu0 %v2407_v14  ;;  %v1833_v0 = vadd.f32 %v1832_v38, %v5280_v55  ;;  %v1994_v62 = vadd.f32 %v1993_v47, %v5282_v49  ;;  %4444 = vpow2.f32 %v2224_v46  ;;  %v2001_v38 = vpop.f32.mrf.mxu0 }
 0x33f   : > { %v5508_v13 = vpop.eup %4428  ;;  %v2060_v37 = vmul.f32 %v1988_v5, %v1988_v5  ;;  %v2059_v60 = vmul.f32 %v1829_v19, %v1829_v19  ;;  %v2061_v30 = vmul.f32 %v1990_v11, %v1990_v11  ;;  %v2230_v61 = vmul.f32 1.442695, %v2120_v39  ;;  %v1844_v41 = vpop.f32.mrf.mxu1 }
 0x340   : > { %4446 = vpow2.f32 %v2228_v50  ;;  %v2062_v48 = vmul.f32 %v1833_v0, %v1833_v0  ;;  %v1835_v27 = vadd.f32 %v1834_v63, %v5284_v58  ;;  %v2064_v20 = vmul.f32 %v1994_v62, %v1994_v62  ;;  %v2005_v18 = vpop.f32.mrf.mxu0 }
 0x341   : > { %v2123_v1 = vsub.f32 0.0, %v2059_v60  ;;  %v2125_v40 = vsub.f32 0.0, %v2061_v30  ;;  %v1996_v29 = vadd.f32 %v1995_v23, %v5286_v59  ;;  %4448 = vpow2.f32 %v2232_v24  ;;  %v1846_v36 = vpop.f32.mrf.mxu1 }
 0x342   : > { %v5512_v31 = vpop.eup %4430  ;;  %v2234_v47 = vmul.f32 1.442695, %v2122_v54  ;;  %v2063_v6 = vmul.f32 %v1835_v27, %v1835_v27  ;;  %4450 = vpow2.f32 %v2226_v57  ;;  %v2124_v7 = vsub.f32 0.0, %v2060_v37  ;;  %v2007_v19 = vpop.f32.mrf.mxu0 }
 0x343   : > { %v5514_v32 = vpop.eup %4432  ;;  %v2236_v8 = vmul.f32 1.442695, %v2123_v1  ;;  %v2065_v12 = vmul.f32 %v1996_v29, %v1996_v29  ;;  %v2240_v17 = vmul.f32 1.442695, %v2125_v40  ;;  %v2126_v63 = vsub.f32 0.0, %v2062_v48 }
 0x344   : > { %v5516_v56 = vpop.eup %4434  ;;  %v2127_v21 = vsub.f32 0.0, %v2063_v6  ;;  %v2410_v22 = vpack.c.bf16 %v5475_v16, %v5447_v3  ;;  %4452 = vpow2.f32 %v2230_v61  ;;  %v2128_v23 = vsub.f32 0.0, %v2064_v20 }
 0x345   : > { %v5520_v4 = vpop.eup %4436  ;;  %v2129_v26 = vsub.f32 0.0, %v2065_v12  ;;  %v2412_v28 = vpack.c.bf16 %v5479_v25, %v5457_v45  ;;  %4454 = vpow2.f32 %v2234_v47  ;;  %v2409_v39 = vpack.c.bf16 %v5463_v53, %v5431_v52 }
 0x346   : > { %v2244_v46 = vmul.f32 1.442695, %v2127_v21  ;;  %2710 = vmatprep.mubr.bf16.mxu1 %v2410_v22  ;;  %v5526_v5 = vpop.eup %4438  ;;  %v2238_v2 = vmul.f32 1.442695, %v2124_v7  ;;  %4456 = vpow2.f32 %v2236_v8  ;;  %v2411_v16 = vpack.c.bf16 %v5471_v44, %v5439_v9 }
 0x347   : > { %v2248_v3 = vmul.f32 1.442695, %v2129_v26  ;;  %3812 = vmatprep.mubr.msk.bf16.mxu0 %vm2629_vm8, %v2412_v28  ;;  %4458 = vpow2.f32 %v2240_v17  ;;  %v2242_v50 = vmul.f32 1.442695, %v2126_v63  ;;  %2711 = vmatmul.mubr.bf16.gmra.mxu1 %v2409_v39  ;;  %v1841_v45 = vadd.f32 %v1840_v43, %v5284_v58 }
 0x348   : > { %v2002_v25 = vadd.f32 %v2001_v38, %v5286_v59  ;;  %v5533_v14 = vpop.eup %4440  ;;  %v2246_v52 = vmul.f32 1.442695, %v2128_v23  ;;  %4460 = vpow2.f32 %v2244_v46  ;;  %2808 = vmatmul.mubr.bf16.gmra.mxu0 %v2411_v16  ;;  %v1845_v53 = vadd.f32 %v1844_v41, %v5280_v55  ;;  %v2286_v41 = vpop.permute.xlu0 %2285 }
 0x349   : > { %v2006_v57 = vadd.f32 %v2005_v18, %v5282_v49  ;;  %v4443_v11 = vpop.eup %4442  ;;  %4462 = vpow2.f32 %v2248_v3  ;;  %v1839_v9 = vadd.f32 %v5496_v15, %v5280_v55  ;;  %v2067_v44 = vmul.f32 %v1841_v45, %v1841_v45 }
 0x34a   : > { %v2069_v24 = vmul.f32 %v2002_v25, %v2002_v25  ;;  %4464 = vpow2.f32 %v2238_v2  ;;  %v2000_v54 = vadd.f32 %v5502_v42, %v5282_v49  ;;  %v1847_v0 = vadd.f32 %v1846_v36, %v5284_v58 }
 0x34b   : > { %v4445_v62 = vpop.eup %4444  ;;  %v2131_v37 = vsub.f32 0.0, %v2067_v44  ;;  %v2070_v30 = vmul.f32 %v1845_v53, %v1845_v53  ;;  %v2008_v61 = vadd.f32 %v2007_v19, %v5286_v59  ;;  %4466 = vpow2.f32 %v2242_v50 }
 0x34c   : > { %v2133_v60 = vsub.f32 0.0, %v2069_v24  ;;  %v2072_v27 = vmul.f32 %v2006_v57, %v2006_v57  ;;  %v2071_v43 = vmul.f32 %v1847_v0, %v1847_v0  ;;  %4468 = vpow2.f32 %v2246_v52  ;;  %v2295_v36 = vpop.permute.xlu0 %2294 }
 0x34d   : > { %v4447_v48 = vpop.eup %4446  ;;  %v2066_v55 = vmul.f32 %v1839_v9, %v1839_v9  ;;  %v2252_v15 = vmul.f32 1.442695, %v2131_v37  ;;  %v2073_v1 = vmul.f32 %v2008_v61, %v2008_v61  ;;  %v2068_v20 = vmul.f32 %v2000_v54, %v2000_v54 }
 0x34e   : > { %v4449_v40 = vpop.eup %4448  ;;  %v2256_v29 = vmul.f32 1.442695, %v2133_v60  ;;  %v2135_v49 = vsub.f32 0.0, %v2071_v43  ;;  %v2414_v58 = vpack.c.bf16 %v5516_v56, %v5504_v10  ;;  %v2134_v38 = vsub.f32 0.0, %v2070_v30 }
 0x34f   : > { %v4451_v42 = vpop.eup %4450  ;;  %v2137_v47 = vsub.f32 0.0, %v2073_v1  ;;  %v2416_v59 = vpack.c.bf16 %v5520_v4, %v5508_v13  ;;  %v2413_v6 = vpack.c.bf16 %v5512_v31, %v5485_v51  ;;  %v2136_v7 = vsub.f32 0.0, %v2072_v27 }
 0x350   : > { %v2260_v8 = vmul.f32 1.442695, %v2135_v49  ;;  %2718 = vmatprep.mubr.bf16.mxu1 %v2414_v58  ;;  %v2415_v12 = vpack.c.bf16 %v5514_v32, %v5491_v35  ;;  %v2418_v17 = vpack.c.bf16 %v4447_v48, %v4443_v11  ;;  %v2130_v21 = vsub.f32 0.0, %v2066_v55  ;;  %v2289_v32 = vpop.permute.xlu1 %2288  ;;  %v2301_v11 = vpop.permute.xlu0 %2300 }
 0x351   : > { %v4453_v63 = vpop.eup %4452  ;;  %4470 = vpow2.f32 %v2252_v15  ;;  %v2264_v10 = vmul.f32 1.442695, %v2137_v47  ;;  %3813 = vmatprep.mubr.msk.bf16.mxu0 %vm2629_vm8, %v2416_v59  ;;  %2719 = vmatmul.mubr.bf16.gmra.mxu1 %v2413_v6  ;;  %v2420_v56 = vpack.c.bf16 %v4449_v40, %v4445_v62  ;;  %v2132_v13 = vsub.f32 0.0, %v2068_v20 }
 0x352   : > { %v4455_v22 = vpop.eup %4454  ;;  %4472 = vpow2.f32 %v2256_v29  ;;  %2816 = vmatmul.mubr.bf16.gmra.mxu0 %v2415_v12  ;;  %2726 = vmatprep.mubr.bf16.mxu1 %v2418_v17  ;;  %v2258_v31 = vmul.f32 1.442695, %v2134_v38  ;;  %v2262_v4 = vmul.f32 1.442695, %v2136_v7  ;;  %v2250_v26 = vmul.f32 1.442695, %v2130_v21 }
 0x353   : > { %v4457_v51 = vpop.eup %4456  ;;  %4474 = vpow2.f32 %v2260_v8  ;;  %3814 = vmatprep.mubr.msk.bf16.mxu0 %vm2629_vm8, %v2420_v56  ;;  %v2254_v18 = vmul.f32 1.442695, %v2132_v13  ;;  %v2417_v2 = vpack.c.bf16 %v4451_v42, %v5526_v5  ;;  %v2419_v16 = vpack.c.bf16 %v4453_v63, %v5533_v14 }
 0x354   : > { %v4459_v35 = vpop.eup %4458  ;;  %4476 = vpow2.f32 %v2264_v10  ;;  %v2292_v25 = vpop.permute.xlu1 %2291  ;;  %v5557_v52 = vand.u32 127, %v756_v33 }
 0x355   : > { %v4461_v23 = vpop.eup %4460  ;;  %4478 = vpow2.f32 %v2258_v31  ;;  %v2307_v48 = vpop.permute.xlu0 %2306 }
 0x356   : > { %v4463_v28 = vpop.eup %4462  ;;  %v2422_v46 = vpack.c.bf16 %v4461_v23, %v4457_v51  ;;  %4480 = vpow2.f32 %v2262_v4  ;;  %vm2333_vm3 = vcmp.eq.s32.totalorder %v2289_v32, %v5557_v52  ;;  %vm2332_vm9 = vcmp.eq.s32.totalorder %v2286_v41, %v5557_v52 }
 0x357   : > { %v4465_v39 = vpop.eup %4464  ;;  %v2424_v3 = vpack.c.bf16 %v4463_v28, %v4459_v35  ;;  %4482 = vpow2.f32 %v2250_v26  ;;  %v3769_v0 = vsel %vm2333_vm3, 1.0, %v4597_v34  ;;  %v3768_v33 = vsel %vm2332_vm9, 1.0, %v4597_v34 }
 0x358   : > { %v4467_v50 = vpop.eup %4466  ;;  %4484 = vpow2.f32 %v2254_v18  ;;  %v2298_v14 = vpop.permute.xlu1 %2297  ;;  %v2380_v30 = vpack.c.bf16 %v3769_v0, %v3768_v33  ;;  %vm2334_vm11 = vcmp.eq.s32.totalorder %v2292_v25, %v5557_v52  ;;  %vm2335_vm12 = vcmp.eq.s32.totalorder %v2295_v36, %v5557_v52 }
 0x359   : > { %2727 = vmatmul.mubr.bf16.gmra.mxu1 %v2417_v2  ;;  %v4469_v45 = vpop.eup %4468  ;;  %v2421_v57 = vpack.c.bf16 %v4467_v50, %v4455_v22  ;;  %vm2336_vm13 = vcmp.eq.s32.totalorder %v2298_v14, %v5557_v52  ;;  %vm2337_vm14 = vcmp.eq.s32.totalorder %v2301_v11, %v5557_v52  ;;  %v3770_v15 = vsel %vm2334_vm11, 1.0, %v4597_v34  ;;  %v2313_v20 = vpop.permute.xlu0 %2312 }
 0x35a   : > { %2824 = vmatmul.mubr.bf16.gmra.mxu0 %v2419_v16  ;;  %2734 = vmatprep.mubr.bf16.mxu1 %v2422_v46  ;;  %v2423_v9 = vpack.c.bf16 %v4469_v45, %v4465_v39  ;;  %v3771_v1 = vsel %vm2335_vm12, 1.0, %v4597_v34  ;;  %v3772_v29 = vsel %vm2336_vm13, 1.0, %v4597_v34  ;;  %v3773_v49 = vsel %vm2337_vm14, 1.0, %v4597_v34 }
 0x35b   : > { %3815 = vmatprep.mubr.msk.bf16.mxu0 %vm2629_vm8, %v2424_v3  ;;  %v2381_v58 = vpack.c.bf16 %v3771_v1, %v3770_v15  ;;  %v2382_v42 = vpack.c.bf16 %v3773_v49, %v3772_v29  ;;  %vm2339_vm0 = vcmp.eq.s32.totalorder %v2307_v48, %v5557_v52  ;;  %vm2341_vm2 = vcmp.eq.s32.totalorder %v2313_v20, %v5557_v52 }
 0x35c   : > { %v2304_v61 = vpop.permute.xlu1 %2303  ;;  %v3775_v6 = vsel %vm2339_vm0, 1.0, %v4597_v34  ;;  %v3777_v8 = vsel %vm2341_vm2, 1.0, %v4597_v34 }
 0x35d   : > { %vm2338_vm15 = vcmp.eq.s32.totalorder %v2304_v61, %v5557_v52  ;;  %v2319_v47 = vpop.permute.xlu0 %2318 }
 0x35e   : > { %v4471_v53 = vpop.eup %4470  ;;  %v3774_v59 = vsel %vm2338_vm15, 1.0, %v4597_v34  ;;  %vm2343_vm5 = vcmp.eq.s32.totalorder %v2319_v47, %v5557_v52 }
 0x35f   : > { %v4473_v5 = vpop.eup %4472  ;;  %v2383_v12 = vpack.c.bf16 %v3775_v6, %v3774_v59  ;;  %v3779_v56 = vsel %vm2343_vm5, 1.0, %v4597_v34 }
 0x360   : > { %v4475_v19 = vpop.eup %4474  ;;  %v2310_v40 = vpop.permute.xlu1 %2309 }
 0x361   : > { %v4477_v44 = vpop.eup %4476  ;;  %2735 = vmatmul.mubr.bf16.gmra.mxu1 %v2421_v57  ;;  %v2426_v24 = vpack.c.bf16 %v4475_v19, %v4471_v53  ;;  %vm2340_vm1 = vcmp.eq.s32.totalorder %v2310_v40, %v5557_v52  ;;  %v2325_v21 = vpop.permute.xlu0 %2324 }
 0x362   : > { %2832 = vmatmul.mubr.bf16.gmra.mxu0 %v2423_v9  ;;  %v2428_v54 = vpack.c.bf16 %v4477_v44, %v4473_v5  ;;  %v4479_v62 = vpop.eup %4478  ;;  %v3776_v7 = vsel %vm2340_vm1, 1.0, %v4597_v34  ;;  %vm2345_vm7 = vcmp.eq.s32.totalorder %v2325_v21, %v5557_v52 }
 0x363   : > { %2742 = vmatprep.mubr.bf16.mxu1 %v2426_v24  ;;  %v4481_v37 = vpop.eup %4480  ;;  %v2384_v17 = vpack.c.bf16 %v3777_v8, %v3776_v7  ;;  %v3781_v13 = vsel %vm2345_vm7, 1.0, %v4597_v34 }
 0x364   : > { %3816 = vmatprep.mubr.msk.bf16.mxu0 %vm2629_vm8, %v2428_v54  ;;  %v4483_v60 = vpop.eup %4482  ;;  %v2316_v38 = vpop.permute.xlu1 %2315 }
 0x365   : > { %v4485_v27 = vpop.eup %4484  ;;  %v2425_v43 = vpack.c.bf16 %v4479_v62, %v4483_v60  ;;  %vm2342_vm4 = vcmp.eq.s32.totalorder %v2316_v38, %v5557_v52  ;;  %v2331_v31 = vpop.permute.xlu0 %2330 }
 0x366   : > { %v2427_v55 = vpack.c.bf16 %v4481_v37, %v4485_v27  ;;  %v3778_v10 = vsel %vm2342_vm4, 1.0, %v4597_v34  ;;  %vm2347_vm3 = vcmp.eq.s32.totalorder %v2331_v31, %v5557_v52 }
 0x367   : > { %v2385_v35 = vpack.c.bf16 %v3779_v56, %v3778_v10  ;;  %v3783_v4 = vsel %vm2347_vm3, 1.0, %v4597_v34 }
 0x368   : > { %v2322_v63 = vpop.permute.xlu1 %2321 }
 0x369   : > { %2743 = vmatmul.mubr.bf16.gmra.mxu1 %v2425_v43  ;;  %vm2344_vm6 = vcmp.eq.s32.totalorder %v2322_v63, %v5557_v52 }
 0x36a   : > { %2840 = vmatmul.mubr.bf16.gmra.mxu0 %v2427_v55  ;;  %4158 = vmatprep.mubr.msk.bf16.mxu1 %vm2875_vm10, %v2380_v30  ;;  %v3780_v22 = vsel %vm2344_vm6, 1.0, %v4597_v34 }
 0x36b   : > { %v2386_v32 = vpack.c.bf16 %v3781_v13, %v3780_v22 }
 0x36c   : > { %v2328_v51 = vpop.permute.xlu1 %2327 }
 0x36d   : > { %vm2346_vm8 = vcmp.eq.s32.totalorder %v2328_v51, %v5557_v52 }
 0x36e   : > { %v3782_v41 = vsel %vm2346_vm8, 1.0, %v4597_v34 }
 0x36f   : > { %v2387_v23 = vpack.c.bf16 %v3783_v4, %v3782_v41 }
 0x371   : > { %4159 = vmatmul.mubr.msk.bf16.vlgmr.msra.gmra.mxu1 %vm2875_vm10, %v2381_v58 }
 0x372   : > { %4162 = vmatprep.mubr.msk.bf16.mxu1 %vm2875_vm10, %v2382_v42 }
 0x379   : > { %4163 = vmatmul.mubr.msk.bf16.gmra.mxu1 %vm2875_vm10, %v2383_v12 }
 0x37a   : > { %4166 = vmatprep.mubr.msk.bf16.mxu1 %vm2875_vm10, %v2384_v17 }
 0x381   : > { %4167 = vmatmul.mubr.msk.bf16.gmra.mxu1 %vm2875_vm10, %v2385_v35 }
 0x382   : > { %4170 = vmatprep.mubr.msk.bf16.mxu1 %vm2875_vm10, %v2386_v32 }
 0x389   : > { %4171 = vmatmul.mubr.msk.bf16.gmra.mxu1 %vm2875_vm10, %v2387_v23 }
 0x3e8   : > { %v5600_v26 = vpop.f32.mrf.mxu1 }
 0x3e9   : > { %v5602_v28 = vpop.f32.mrf.mxu0 }
 0x3ea   : > { %v5604_v18 = vpop.f32.mrf.mxu1 }
 0x3eb   : > { %v2787_v46 = vpop.f32.mrf.mxu0 }
 0x3ec   : > { %v3997_v39 = vpop.f32.mrf.mxu1 }
 0x3ed   : > { %v2788_v2 = vpop.f32.mrf.mxu0 }
 0x3ee   : > { %v3998_v3 = vpop.f32.mrf.mxu1 }
 0x3ef   : > { %v3999_v16 = vadd.f32 %v3998_v3, %v3997_v39  ;;  %v2790_v50 = vpop.f32.mrf.mxu0 }
 0x3f1   : > { %v5606_v45 = vadd.f32 %v3999_v16, %v2788_v2 }
 0x3f3   : > { %v4000_v25 = vpop.f32.mrf.mxu1  ;;  %v5608_v36 = vpop.f32.mrf.mxu0 }
 0x3f5   : > { %v4001_v34 = vpop.f32.mrf.mxu1  ;;  %v2795_v52 = vpop.f32.mrf.mxu0 }
 0x3f6   : > { %v4002_v3 = vadd.f32 %v4001_v34, %v4000_v25  ;;  %v3996_v52 = vadd.f32 %v5604_v18, %v5600_v26 }
 0x3f7   : > { %v4003_v53 = vpop.f32.mrf.mxu1  ;;  %v5610_v5 = vpop.f32.mrf.mxu0 }
 0x3f8   : > { %v2786_v34 = vadd.f32 %v3996_v52, %v5602_v28 }
 0x3f9   : > { %v4004_v57 = vpop.f32.mrf.mxu1  ;;  %v2798_v19 = vpop.f32.mrf.mxu0 }
 0x3fd   : > { %v4006_v14 = vpop.f32.mrf.mxu1 }
 0x3fe   : > { %v2801_v11 = vpop.f32.mrf.mxu0 }
 0x3ff   : > { %v4007_v9 = vpop.f32.mrf.mxu1 }
 0x400   : > { %v4008_v44 = vadd.f32 %v4007_v9, %v4006_v14  ;;  %v2803_v24 = vpop.f32.mrf.mxu0 }
 0x401   : > { %v5612_v54 = vpop.f32.mrf.mxu1 }
 0x402   : > { %v5614_v0 = vpop.f32.mrf.mxu0  ;;  %v5616_v33 = vadd.f32 %v4008_v44, %v2801_v11  ;;  %v4005_v11 = vadd.f32 %v4004_v57, %v4003_v53  ;;  %v2794_v44 = vadd.f32 %v4002_v3, %v5608_v36 }
 0x403   : > { %v5618_v62 = vpop.f32.mrf.mxu1 }
 0x404   : > { %v2806_v37 = vpop.f32.mrf.mxu0 }
 0x405   : > { %v5676_v37 = vld [vmem:[%s6035_s10] ss:$0 sm:$0xff] }
 0x407   : > { %v5620_v60 = vpop.f32.mrf.mxu1 }
 0x408   : > { %v5622_v30 = vpop.f32.mrf.mxu0 }
 0x409   : > { %v4013_v61 = vpop.f32.mrf.mxu1 }
 0x40a   : > { %v2811_v48 = vpop.f32.mrf.mxu0 }
 0x40b   : > { %v5624_v27 = vpop.f32.mrf.mxu1 }
 0x40c   : > { %v5626_v43 = vpop.f32.mrf.mxu0 }
 0x40d   : > { %v5628_v55 = vpop.f32.mrf.mxu1 }
 0x40e   : > { %v2814_v15 = vpop.f32.mrf.mxu0 }
 0x40f   : > { %v2797_v15 = vadd.f32 %v4005_v11, %v5610_v5 }
 0x411   : > { %v4018_v1 = vpop.f32.mrf.mxu1 }
 0x412   : > { %v2817_v40 = vpop.f32.mrf.mxu0 }
 0x413   : > { %v4019_v20 = vpop.f32.mrf.mxu1 }
 0x414   : > { %v4020_v29 = vadd.f32 %v4019_v20, %v4018_v1  ;;  %v2819_v49 = vpop.f32.mrf.mxu0  ;;  %v4014_v20 = vadd.f32 %v4013_v61, %v5620_v60 }
 0x415   : > { %v5630_v58 = vpop.f32.mrf.mxu1 }
 0x416   : > { %v5632_v42 = vpop.f32.mrf.mxu0  ;;  %v5634_v38 = vadd.f32 %v4020_v29, %v2817_v40  ;;  %v2810_v60 = vadd.f32 %v4014_v20, %v5622_v30  ;;  %v4318_v30 = vld [vmem:[%s6039_s14 + $0x38] sm:$0xff]  }
 0x417   : > { %v5636_v47 = vpop.f32.mrf.mxu1  ;;  %4174 = vmatprep.subr.bf16.mxu0 %v4318_v30 }
 0x418   : > { %v2822_v59 = vpop.f32.mrf.mxu0  ;;  %4175 = vmatpush3.bf16.msra.mxu0 %v4318_v30 }
 0x419   : > { %v5638_v6 = vpop.f32.mrf.mxu1  ;;  %v4017_v59 = vadd.f32 %v5628_v55, %v5624_v27 }
 0x41a   : > { %v5640_v7 = vpop.f32.mrf.mxu0 }
 0x41b   : > { %v5642_v8 = vpop.f32.mrf.mxu1  ;;  %v2813_v27 = vadd.f32 %v4017_v59, %v5626_v43 }
 0x41c   : > { %v2827_v12 = vpop.f32.mrf.mxu0 }
 0x41d   : > { %v5644_v17 = vpop.f32.mrf.mxu1 }
 0x41e   : > { %v5646_v63 = vpop.f32.mrf.mxu0 }
 0x41f   : > { %v5648_v21 = vpop.f32.mrf.mxu1 }
 0x420   : > { %v2830_v10 = vpop.f32.mrf.mxu0  ;;  %v4029_v11 = vadd.f32 %v5648_v21, %v5644_v17  ;;  %v4319_v21 = vld [vmem:[%s6039_s14 + $0x30] sm:$0xff]  }
 0x421   : > { %v4030_v56 = vpop.f32.mrf.mxu1  ;;  %4176 = vmatprep.subr.bf16.mxu0 %v4319_v21 }
 0x422   : > { %v2833_v22 = vpop.f32.mrf.mxu0  ;;  %4177 = vmatpush3.bf16.msra.mxu0 %v4319_v21 }
 0x423   : > { %v4031_v13 = vpop.f32.mrf.mxu1 }
 0x424   : > { %v4032_v51 = vadd.f32 %v4031_v13, %v4030_v56  ;;  %v2835_v31 = vpop.f32.mrf.mxu0  ;;  %v4011_v56 = vadd.f32 %v5618_v62, %v5612_v54 }
 0x425   : > { %v5650_v35 = vpop.f32.mrf.mxu1 }
 0x426   : > { %v5652_v32 = vpop.f32.mrf.mxu0  ;;  %v5654_v41 = vadd.f32 %v4032_v51, %v2833_v22  ;;  %v2805_v62 = vadd.f32 %v4011_v56, %v5614_v0 }
 0x427   : > { %v5656_v4 = vpop.f32.mrf.mxu1 }
 0x428   : > { %v2838_v23 = vpop.f32.mrf.mxu0 }
 0x429   : > { %v5658_v46 = vpop.f32.mrf.mxu1 }
 0x42a   : > { %v5660_v39 = vpop.f32.mrf.mxu0 }
 0x42b   : > { %v5662_v2 = vpop.f32.mrf.mxu1 }
 0x42c   : > { %v2843_v16 = vpop.f32.mrf.mxu0 }
 0x42d   : > { %v5664_v50 = vpop.f32.mrf.mxu1 }
 0x42e   : > { %v5668_v19 = vpop.f32.mrf.mxu0 }
 0x42f   : > { %v5670_v14 = vpop.f32.mrf.mxu1 }
 0x430   : > { %v2846_v9 = vpop.f32.mrf.mxu0 }
 0x431   : > { %v4160_v24 = vpop.f32.mrf.mxu1 }
 0x432   : > { %v2946_v25 = vadd.f32 %v4160_v24, %v2794_v44  ;;  %v4023_v24 = vadd.f32 %v5636_v47, %v5630_v58 }
 0x433   : > { %v2937_v48 = vpop.f32.mrf.mxu1 }
 0x434   : > { %v5680_v26 = vadd.f32 %v5676_v37, %v2946_v25  ;;  %v2938_v18 = vadd.f32 %v2937_v48, %v2786_v34  ;;  %v2829_v34 = vadd.f32 %v4029_v11, %v5646_v63  ;;  %v2821_v63 = vadd.f32 %v4023_v24, %v5632_v42  ;;  %v4321_v42 = vld [vmem:[%s6039_s14 + $0x20] sm:$0xff]  }
 0x435   : > { %v4161_v53 = vpop.f32.mrf.mxu1 }
 0x436   : > { %v5684_v57 = vadd.f32 %v5676_v37, %v2938_v18  ;;  %v2949_v36 = vadd.f32 %v4161_v53, %v2797_v15  ;;  %3027 = vadd.xlane.f32.xlu0 %v5680_v26  ;;  %v3057_v28 = vmul.f32 %v5680_v26, %v5680_v26  ;;  %v4320_v15 = vld [vmem:[%s6039_s14 + $0x28] sm:$0xff]  }
 0x437   : > { %v2940_v1 = vpop.f32.mrf.mxu1  ;;  %4178 = vmatprep.subr.bf16.mxu0 %v4320_v15 }
 0x438   : > { %3023 = vadd.xlane.f32.xlu1 %v5684_v57  ;;  %v5692_v29 = vadd.f32 %v5676_v37, %v2949_v36  ;;  %v2941_v5 = vadd.f32 %v2940_v1, %v5606_v45  ;;  %v3055_v12 = vmul.f32 %v5684_v57, %v5684_v57  ;;  %4179 = vmatpush3.bf16.msra.mxu0 %v4320_v15 }
 0x439   : > { %v4164_v40 = vpop.f32.mrf.mxu1  ;;  %4180 = vmatprep.subr.bf16.mxu0 %v4321_v42 }
 0x43a   : > { %3075 = vadd.xlane.f32.xlu0 %v3057_v28  ;;  %v5701_v10 = vadd.f32 %v5676_v37, %v2941_v5  ;;  %v3058_v61 = vmul.f32 %v5692_v29, %v5692_v29  ;;  %v2962_v22 = vadd.f32 %v4164_v40, %v2810_v60  ;;  %v4041_v5 = vadd.f32 %v5670_v14, %v5664_v50 }
 0x43b   : > { %v2953_v49 = vpop.f32.mrf.mxu1 }
 0x43c   : > { %3029 = vadd.xlane.f32.xlu1 %v5692_v29  ;;  %v3056_v13 = vmul.f32 %v5701_v10, %v5701_v10  ;;  %v5716_v31 = vadd.f32 %v5676_v37, %v2962_v22  ;;  %v2954_v54 = vadd.f32 %v2953_v49, %v5616_v33  ;;  %v4026_v33 = vadd.f32 %v5642_v8, %v5638_v6 }
 0x43d   : > { %v4165_v45 = vpop.f32.mrf.mxu1  ;;  %4181 = vmatpush3.bf16.msra.mxu0 %v4321_v42  ;;  %v2845_v60 = vadd.f32 %v4041_v5, %v5668_v19 }
 0x43e   : > { %3071 = vadd.xlane.f32.xlu0 %v3055_v12  ;;  %v2965_v55 = vadd.f32 %v4165_v45, %v2813_v27  ;;  %v5725_v16 = vadd.f32 %v5676_v37, %v2954_v54  ;;  %v3061_v9 = vmul.f32 %v5716_v31, %v5716_v31  ;;  %v2826_v44 = vadd.f32 %v4026_v33, %v5640_v7  ;;  %v4324_v27 = vld [vmem:[%s6039_s14 + $0x8] sm:$0xff]  }
 0x43f   : > { %v2956_v51 = vpop.f32.mrf.mxu1  ;;  %v4035_v12 = vadd.f32 %v5656_v4, %v5650_v35 }
 0x440   : > { %3077 = vadd.xlane.f32.xlu1 %v3058_v61  ;;  %v5721_v43 = vadd.f32 %v5676_v37, %v2965_v55  ;;  %v2957_v23 = vadd.f32 %v2956_v51, %v2805_v62  ;;  %v3059_v17 = vmul.f32 %v5725_v16, %v5725_v16 }
 0x441   : > { %v4168_v3 = vpop.f32.mrf.mxu1  ;;  %v2837_v22 = vadd.f32 %v4035_v12, %v5652_v32  ;;  %v4325_v32 = vld [vmem:[%s6039_s14] sm:$0xff]  }
 0x442   : > { %3025 = vadd.xlane.f32.xlu0 %v5701_v10  ;;  %v5731_v0 = vadd.f32 %v5676_v37, %v2957_v23  ;;  %v3062_v6 = vmul.f32 %v5721_v43, %v5721_v43  ;;  %v2978_v25 = vadd.f32 %v4168_v3, %v2826_v44 }
 0x443   : > { %v2969_v52 = vpop.f32.mrf.mxu1 }
 0x444   : > { %3073 = vadd.xlane.f32.xlu1 %v3056_v13  ;;  %v3060_v48 = vmul.f32 %v5731_v0, %v5731_v0  ;;  %v5753_v58 = vadd.f32 %v5676_v37, %v2978_v25  ;;  %v2970_v47 = vadd.f32 %v2969_v52, %v5634_v38  ;;  %v4038_v38 = vadd.f32 %v5662_v2, %v5658_v46  ;;  %v4322_v46 = vld [vmem:[%s6039_s14 + $0x18] sm:$0xff]  }
 0x445   : > { %v4169_v8 = vpop.f32.mrf.mxu1  ;;  %4182 = vmatprep.subr.bf16.mxu0 %v4322_v46 }
 0x446   : > { %3035 = vadd.xlane.f32.xlu0 %v5716_v31  ;;  %v2981_v7 = vadd.f32 %v4169_v8, %v2829_v34  ;;  %v5765_v28 = vadd.f32 %v5676_v37, %v2970_v47  ;;  %v3065_v49 = vmul.f32 %v5753_v58, %v5753_v58  ;;  %v2842_v2 = vadd.f32 %v4038_v38, %v5660_v39  ;;  %v4323_v39 = vld [vmem:[%s6039_s14 + $0x10] sm:$0xff]  }
 0x447   : > { %v2972_v18 = vpop.f32.mrf.mxu1  ;;  %4183 = vmatpush3.bf16.msra.mxu0 %v4322_v46 }
 0x448   : > { %3037 = vadd.xlane.f32.xlu1 %v5721_v43  ;;  %v5761_v53 = vadd.f32 %v5676_v37, %v2981_v7  ;;  %v2973_v36 = vadd.f32 %v2972_v18, %v2821_v63  ;;  %v3063_v61 = vmul.f32 %v5765_v28, %v5765_v28  ;;  %4184 = vmatprep.subr.bf16.mxu0 %v4323_v39 }
 0x449   : > { %v4172_v1 = vpop.f32.mrf.mxu1 }
 0x44a   : > { %3031 = vadd.xlane.f32.xlu0 %v5725_v16  ;;  %v5774_v40 = vadd.f32 %v5676_v37, %v2973_v36  ;;  %v3066_v59 = vmul.f32 %v5761_v53, %v5761_v53  ;;  %v2994_v14 = vadd.f32 %v4172_v1, %v2842_v2 }
 0x44b   : > { %v2985_v20 = vpop.f32.mrf.mxu1  ;;  %4185 = vmatpush3.bf16.msra.mxu0 %v4323_v39 }
 0x44c   : > { %3033 = vadd.xlane.f32.xlu1 %v5731_v0  ;;  %v3064_v56 = vmul.f32 %v5774_v40, %v5774_v40  ;;  %v5799_v4 = vadd.f32 %v5676_v37, %v2994_v14  ;;  %v2986_v19 = vadd.f32 %v2985_v20, %v5654_v41  ;;  %4186 = vmatprep.subr.bf16.mxu0 %v4324_v27 }
 0x44d   : > { %v4173_v50 = vpop.f32.mrf.mxu1 }
 0x44e   : > { %3083 = vadd.xlane.f32.xlu0 %v3061_v9  ;;  %v2997_v45 = vadd.f32 %v4173_v50, %v2845_v60  ;;  %v5811_v30 = vadd.f32 %v5676_v37, %v2986_v19  ;;  %v3069_v62 = vmul.f32 %v5799_v4, %v5799_v4 }
 0x44f   : > { %v2988_v35 = vpop.f32.mrf.mxu1  ;;  %4187 = vmatpush3.bf16.msra.mxu0 %v4324_v27 }
 0x450   : > { %3085 = vadd.xlane.f32.xlu1 %v3062_v6  ;;  %v5807_v55 = vadd.f32 %v5676_v37, %v2997_v45  ;;  %v2989_v13 = vadd.f32 %v2988_v35, %v2837_v22  ;;  %4188 = vmatprep.subr.bf16.mxu0 %v4325_v32  ;;  %v3067_v51 = vmul.f32 %v5811_v30, %v5811_v30 }
 0x452   : > { %3079 = vadd.xlane.f32.xlu0 %v3059_v17  ;;  %v5818_v41 = vadd.f32 %v5676_v37, %v2989_v13  ;;  %v3070_v37 = vmul.f32 %v5807_v55, %v5807_v55 }
 0x453   : > { %4189 = vmatpush3.bf16.msra.mxu0 %v4325_v32 }
 0x454   : > { %3081 = vadd.xlane.f32.xlu1 %v3060_v48  ;;  %v3068_v54 = vmul.f32 %v5818_v41, %v5818_v41 }
 0x456   : > { %3043 = vadd.xlane.f32.xlu0 %v5753_v58 }
 0x458   : > { %3045 = vadd.xlane.f32.xlu1 %v5761_v53 }
 0x45a   : > { %3039 = vadd.xlane.f32.xlu0 %v5765_v28 }
 0x45c   : > { %3041 = vadd.xlane.f32.xlu1 %v5774_v40 }
 0x45e   : > { %3091 = vadd.xlane.f32.xlu0 %v3065_v49 }
 0x460   : > { %3093 = vadd.xlane.f32.xlu1 %v3066_v59 }
 0x462   : > { %3087 = vadd.xlane.f32.xlu0 %v3063_v61 }
 0x464   : > { %3089 = vadd.xlane.f32.xlu1 %v3064_v56 }
 0x466   : > { %3051 = vadd.xlane.f32.xlu0 %v5799_v4 }
 0x468   : > { %3053 = vadd.xlane.f32.xlu1 %v5807_v55 }
 0x46a   : > { %3047 = vadd.xlane.f32.xlu0 %v5811_v30 }
 0x46c   : > { %3049 = vadd.xlane.f32.xlu1 %v5818_v41 }
 0x46e   : > { %3095 = vadd.xlane.f32.xlu0 %v3067_v51 }
 0x470   : > { %3097 = vadd.xlane.f32.xlu1 %v3068_v54 }
 0x472   : > { %3099 = vadd.xlane.f32.xlu0 %v3069_v62 }
 0x474   : > { %3101 = vadd.xlane.f32.xlu1 %v3070_v37 }
 0x4bf   : > { %v3028_v23 = vpop.xlane.xlu0 %3027 }
 0x4c0   : > { %v5830_v3 = vmul.f32 0.0078125, %v3028_v23 }
 0x4c1   : > { %v3024_v33 = vpop.xlane.xlu1 %3023 }
 0x4c2   : > { %v3137_v11 = vmul.f32 %v5830_v3, %v5830_v3  ;;  %v3103_v9 = vmul.f32 0.0078125, %v3024_v33 }
 0x4c3   : > { %v3076_v52 = vpop.xlane.xlu0 %3075 }
 0x4c4   : > { %v3121_v44 = vmul.f32 0.0078125, %v3076_v52  ;;  %v3135_v34 = vmul.f32 %v3103_v9, %v3103_v9 }
 0x4c5   : > { %v3030_v6 = vpop.xlane.xlu1 %3029 }
 0x4c6   : > { %v3153_v8 = vsub.f32 %v3121_v44, %v3137_v11  ;;  %v3106_v24 = vmul.f32 0.0078125, %v3030_v6  ;;  %v3199_v44 = vsub.f32 %v5684_v57, %v3103_v9 }
 0x4c7   : > { %v3072_v25 = vpop.xlane.xlu0 %3071 }
 0x4c8   : > { %v3119_v17 = vmul.f32 0.0078125, %v3072_v25  ;;  %v3169_v7 = vadd.f32 1e-05, %v3153_v8  ;;  %v3138_v48 = vmul.f32 %v3106_v24, %v3106_v24  ;;  %v3202_v32 = vsub.f32 %v5692_v29, %v3106_v24 }
 0x4c9   : > { %v3078_v21 = vpop.xlane.xlu1 %3077  ;;  %v3201_v8 = vsub.f32 %v5680_v26, %v5830_v3  ;;  %v5858_v26 = vld [vmem:[%s6037_s12] ss:$0 sm:$0xff] }
 0x4ca   : > { %v3151_v18 = vsub.f32 %v3119_v17, %v3135_v34  ;;  %v3122_v47 = vmul.f32 0.0078125, %v3078_v21  ;;  %4486 = vrsqrt.f32 %v3169_v7 }
 0x4cb   : > { %v3026_v63 = vpop.xlane.xlu0 %3025 }
 0x4cc   : > { %v3167_v15 = vadd.f32 1e-05, %v3151_v18  ;;  %v3154_v36 = vsub.f32 %v3122_v47, %v3138_v48  ;;  %v3104_v1 = vmul.f32 0.0078125, %v3026_v63 }
 0x4cd   : > { %v3074_v42 = vpop.xlane.xlu1 %3073 }
 0x4ce   : > { %v3170_v38 = vadd.f32 1e-05, %v3154_v36  ;;  %v3136_v20 = vmul.f32 %v3104_v1, %v3104_v1  ;;  %4488 = vrsqrt.f32 %v3167_v15  ;;  %v3120_v5 = vmul.f32 0.0078125, %v3074_v42 }
 0x4cf   : > { %v3036_v49 = vpop.xlane.xlu0 %3035  ;;  %v3200_v47 = vsub.f32 %v5701_v10, %v3104_v1 }
 0x4d0   : > { %4490 = vrsqrt.f32 %v3170_v38  ;;  %v3152_v46 = vsub.f32 %v3120_v5, %v3136_v20  ;;  %v5834_v50 = vmul.f32 0.0078125, %v3036_v49 }
 0x4d1   : > { %v3038_v2 = vpop.xlane.xlu1 %3037 }
 0x4d2   : > { %v3168_v59 = vadd.f32 1e-05, %v3152_v46  ;;  %v5836_v60 = vmul.f32 0.0078125, %v3038_v2  ;;  %v3141_v39 = vmul.f32 %v5834_v50, %v5834_v50  ;;  %v5871_v46 = vld [vmem:[%s6038_s13] ss:$0 sm:$0xff] }
 0x4d3   : > { %v3032_v12 = vpop.xlane.xlu0 %3031 }
 0x4d4   : > { %4492 = vrsqrt.f32 %v3168_v59  ;;  %v5840_v45 = vmul.f32 0.0078125, %v3032_v12  ;;  %v3142_v19 = vmul.f32 %v5836_v60, %v5836_v60 }
 0x4d5   : > { %v3034_v14 = vpop.xlane.xlu1 %3033 }
 0x4d6   : > { %v5845_v51 = vmul.f32 0.0078125, %v3034_v14  ;;  %v3139_v37 = vmul.f32 %v5840_v45, %v5840_v45 }
 0x4d7   : > { %v3084_v61 = vpop.xlane.xlu0 %3083  ;;  %v4487_v13 = vpop.eup %4486 }
 0x4d8   : > { %v3125_v56 = vmul.f32 0.0078125, %v3084_v61  ;;  %v3140_v24 = vmul.f32 %v5845_v51, %v5845_v51  ;;  %v3217_v48 = vmul.f32 %v4487_v13, %v3201_v8  ;;  %v3205_v8 = vsub.f32 %v5716_v31, %v5834_v50 }
 0x4d9   : > { %v3086_v35 = vpop.xlane.xlu1 %3085 }
 0x4da   : > { %v3157_v22 = vsub.f32 %v3125_v56, %v3141_v39  ;;  %v3126_v27 = vmul.f32 0.0078125, %v3086_v35  ;;  %v3240_v10 = vmul.f32 %v5858_v26, %v3217_v48  ;;  %v3203_v48 = vsub.f32 %v5725_v16, %v5840_v45 }
 0x4db   : > { %v3080_v54 = vpop.xlane.xlu0 %3079  ;;  %v4489_v62 = vpop.eup %4488 }
 0x4dc   : > { %v3173_v23 = vadd.f32 1e-05, %v3157_v22  ;;  %v3158_v33 = vsub.f32 %v3126_v27, %v3142_v19  ;;  %v3123_v52 = vmul.f32 0.0078125, %v3080_v54  ;;  %v3215_v7 = vmul.f32 %v4489_v62, %v3199_v44 }
 0x4dd   : > { %v4491_v11 = vpop.eup %4490  ;;  %v3082_v6 = vpop.xlane.xlu1 %3081  ;;  %v3263_v35 = vadd.f32 %v5871_v46, %v3240_v10 }
 0x4de   : > { %v3218_v25 = vmul.f32 %v4491_v11, %v3202_v32  ;;  %v3174_v34 = vadd.f32 1e-05, %v3158_v33  ;;  %v3155_v29 = vsub.f32 %v3123_v52, %v3139_v37  ;;  %4494 = vrsqrt.f32 %v3173_v23 }
 0x4df   : > { %v3124_v17 = vmul.f32 0.0078125, %v3082_v6  ;;  %v3044_v21 = vpop.xlane.xlu0 %3043  ;;  %v3238_v38 = vmul.f32 %v5858_v26, %v3215_v7 }
 0x4e0   : > { %4496 = vrsqrt.f32 %v3174_v34  ;;  %v3171_v18 = vadd.f32 1e-05, %v3155_v29  ;;  %v3241_v63 = vmul.f32 %v5858_v26, %v3218_v25  ;;  %v5862_v20 = vmul.f32 0.0078125, %v3044_v21 }
 0x4e1   : > { %v3156_v57 = vsub.f32 %v3124_v17, %v3140_v24  ;;  %v3046_v9 = vpop.xlane.xlu1 %3045  ;;  %v4493_v3 = vpop.eup %4492  ;;  %v3261_v12 = vadd.f32 %v5871_v46, %v3238_v38  ;;  %v3206_v25 = vsub.f32 %v5721_v43, %v5836_v60  ;;  %v3204_v43 = vsub.f32 %v5731_v0, %v5845_v51 }
 0x4e2   : > { %4498 = vrsqrt.f32 %v3171_v18  ;;  %v3216_v42 = vmul.f32 %v4493_v3, %v3200_v47  ;;  %v5865_v1 = vmul.f32 0.0078125, %v3046_v9  ;;  %v3264_v2 = vadd.f32 %v5871_v46, %v3241_v63 }
 0x4e3   : > { %v3172_v15 = vadd.f32 1e-05, %v3156_v57  ;;  %v3040_v36 = vpop.xlane.xlu0 %3039  ;;  %v3145_v61 = vmul.f32 %v5862_v20, %v5862_v20 }
 0x4e4   : > { %v3239_v49 = vmul.f32 %v5858_v26, %v3216_v42  ;;  %v5878_v39 = vmul.f32 0.0078125, %v3040_v36  ;;  %v3146_v19 = vmul.f32 %v5865_v1, %v5865_v1  ;;  %v3278_v62 = vpack.c.bf16 %v3264_v2, %v3263_v35 }
 0x4e5   : > { %4500 = vrsqrt.f32 %v3172_v15  ;;  %v3042_v5 = vpop.xlane.xlu1 %3041 }
 0x4e6   : > { %v3262_v14 = vadd.f32 %v5871_v46, %v3239_v49  ;;  %v5883_v13 = vmul.f32 0.0078125, %v3042_v5  ;;  %v3143_v33 = vmul.f32 %v5878_v39, %v5878_v39 }
 0x4e7   : > { %v3092_v59 = vpop.xlane.xlu0 %3091 }
 0x4e8   : > { %v3129_v56 = vmul.f32 0.0078125, %v3092_v59  ;;  %v3277_v27 = vpack.c.bf16 %v3262_v14, %v3261_v12  ;;  %v3144_v29 = vmul.f32 %v5883_v13, %v5883_v13 }
 0x4e9   : > { %v3094_v22 = vpop.xlane.xlu1 %3093 }
 0x4ea   : > { %v3161_v32 = vsub.f32 %v3129_v56, %v3145_v61  ;;  %v3130_v54 = vmul.f32 0.0078125, %v3094_v22  ;;  %4190 = vmatprep.mubr.bf16.mxu0 %v3277_v27 }
 0x4eb   : > { %v3088_v37 = vpop.xlane.xlu0 %3087  ;;  %v4495_v23 = vpop.eup %4494  ;;  %4191 = vmatmul.mubr.bf16.vlgmr.msra.gmra.mxu0 %v3278_v62 }
 0x4ec   : > { %v3177_v52 = vadd.f32 1e-05, %v3161_v32  ;;  %v3162_v11 = vsub.f32 %v3130_v54, %v3146_v19  ;;  %v3127_v44 = vmul.f32 0.0078125, %v3088_v37  ;;  %v3221_v50 = vmul.f32 %v4495_v23, %v3205_v8 }
 0x4ed   : > { %v4497_v6 = vpop.eup %4496  ;;  %v3090_v34 = vpop.xlane.xlu1 %3089  ;;  %v3209_v8 = vsub.f32 %v5753_v58, %v5862_v20 }
 0x4ee   : > { %v3178_v24 = vadd.f32 1e-05, %v3162_v11  ;;  %v3159_v17 = vsub.f32 %v3127_v44, %v3143_v33  ;;  %v3128_v21 = vmul.f32 0.0078125, %v3090_v34  ;;  %4502 = vrsqrt.f32 %v3177_v52 }
 0x4ef   : > { %v4499_v7 = vpop.eup %4498  ;;  %v3052_v18 = vpop.xlane.xlu0 %3051  ;;  %v3222_v47 = vmul.f32 %v4497_v6, %v3206_v25  ;;  %v3244_v38 = vmul.f32 %v5858_v26, %v3221_v50  ;;  %v3210_v25 = vsub.f32 %v5761_v53, %v5865_v1  ;;  %v3207_v34 = vsub.f32 %v5765_v28, %v5878_v39 }
 0x4f0   : > { %4504 = vrsqrt.f32 %v3178_v24  ;;  %v3175_v57 = vadd.f32 1e-05, %v3159_v17  ;;  %v3160_v31 = vsub.f32 %v3128_v21, %v3144_v29  ;;  %v3219_v9 = vmul.f32 %v4499_v7, %v3203_v48 }
 0x4f1   : > { %v3054_v60 = vpop.xlane.xlu1 %3053  ;;  %v3245_v15 = vmul.f32 %v5858_v26, %v3222_v47  ;;  %v5908_v12 = vmul.f32 0.0078125, %v3052_v18  ;;  %v3267_v56 = vadd.f32 %v5871_v46, %v3244_v38  ;;  %v3208_v18 = vsub.f32 %v5774_v40, %v5883_v13 }
 0x4f2   : > { %v4501_v3 = vpop.eup %4500  ;;  %4506 = vrsqrt.f32 %v3175_v57  ;;  %v3176_v63 = vadd.f32 1e-05, %v3160_v31  ;;  %v3242_v16 = vmul.f32 %v5858_v26, %v3219_v9  ;;  %v5913_v35 = vmul.f32 0.0078125, %v3054_v60 }
 0x4f3   : > { %v3048_v36 = vpop.xlane.xlu0 %3047  ;;  %v3220_v42 = vmul.f32 %v4501_v3, %v3204_v43  ;;  %v3268_v51 = vadd.f32 %v5871_v46, %v3245_v15  ;;  %v3149_v33 = vmul.f32 %v5908_v12, %v5908_v12 }
 0x4f4   : > { %4508 = vrsqrt.f32 %v3176_v63  ;;  %v5899_v45 = vmul.f32 0.0078125, %v3048_v36  ;;  %v3265_v2 = vadd.f32 %v5871_v46, %v3242_v16  ;;  %v3150_v29 = vmul.f32 %v5913_v35, %v5913_v35 }
 0x4f5   : > { %v3050_v10 = vpop.xlane.xlu1 %3049  ;;  %v3243_v5 = vmul.f32 %v5858_v26, %v3220_v42  ;;  %v3280_v62 = vpack.c.bf16 %v3268_v51, %v3267_v56 }
 0x4f6   : > { %v5903_v0 = vmul.f32 0.0078125, %v3050_v10  ;;  %v3147_v14 = vmul.f32 %v5899_v45, %v5899_v45  ;;  %v3211_v36 = vsub.f32 %v5811_v30, %v5899_v45 }
 0x4f7   : > { %v3096_v49 = vpop.xlane.xlu0 %3095  ;;  %v3266_v59 = vadd.f32 %v5871_v46, %v3243_v5  ;;  %v3213_v5 = vsub.f32 %v5799_v4, %v5908_v12 }
 0x4f8   : > { %v3131_v61 = vmul.f32 0.0078125, %v3096_v49  ;;  %v3148_v27 = vmul.f32 %v5903_v0, %v5903_v0  ;;  %v3212_v16 = vsub.f32 %v5818_v41, %v5903_v0 }
 0x4f9   : > { %v3098_v19 = vpop.xlane.xlu1 %3097  ;;  %v3279_v22 = vpack.c.bf16 %v3266_v59, %v3265_v2  ;;  %v3214_v59 = vsub.f32 %v5807_v55, %v5913_v35 }
 0x4fa   : > { %v3163_v32 = vsub.f32 %v3131_v61, %v3147_v14  ;;  %v3132_v54 = vmul.f32 0.0078125, %v3098_v19 }
 0x4fb   : > { %4194 = vmatprep.mubr.bf16.mxu0 %v3279_v22  ;;  %v3100_v37 = vpop.xlane.xlu0 %3099  ;;  %v4503_v23 = vpop.eup %4502 }
 0x4fc   : > { %v3179_v52 = vadd.f32 1e-05, %v3163_v32  ;;  %v3164_v11 = vsub.f32 %v3132_v54, %v3148_v27  ;;  %4195 = vmatmul.mubr.bf16.gmra.mxu0 %v3280_v62  ;;  %v3133_v44 = vmul.f32 0.0078125, %v3100_v37  ;;  %v3225_v47 = vmul.f32 %v4503_v23, %v3209_v8  ;;  %v3833_v27 = vld [vmem:[%s6040_s15] ss:$0 sm:$0xff] }
 0x4fd   : > { %v4505_v6 = vpop.eup %4504  ;;  %v3102_v24 = vpop.xlane.xlu1 %3101 }
 0x4fe   : > { %4510 = vrsqrt.f32 %v3179_v52  ;;  %v3180_v17 = vadd.f32 1e-05, %v3164_v11  ;;  %v3165_v21 = vsub.f32 %v3133_v44, %v3149_v33  ;;  %v3134_v7 = vmul.f32 0.0078125, %v3102_v24 }
 0x4ff   : > { %v4507_v48 = vpop.eup %4506  ;;  %v3226_v58 = vmul.f32 %v4505_v6, %v3210_v25  ;;  %v3248_v43 = vmul.f32 %v5858_v26, %v3225_v47 }
 0x500   : > { %4512 = vrsqrt.f32 %v3180_v17  ;;  %v3181_v20 = vadd.f32 1e-05, %v3165_v21  ;;  %v3166_v53 = vsub.f32 %v3134_v7, %v3150_v29  ;;  %v3223_v1 = vmul.f32 %v4507_v48, %v3207_v34 }
 0x501   : > { %v4509_v57 = vpop.eup %4508  ;;  %v3249_v28 = vmul.f32 %v5858_v26, %v3226_v58  ;;  %v3271_v3 = vadd.f32 %v5871_v46, %v3248_v43 }
 0x502   : > { %4514 = vrsqrt.f32 %v3181_v20  ;;  %v3182_v39 = vadd.f32 1e-05, %v3166_v53  ;;  %v3224_v31 = vmul.f32 %v4509_v57, %v3208_v18  ;;  %v3246_v50 = vmul.f32 %v5858_v26, %v3223_v1 }
 0x503   : > { %v3272_v40 = vadd.f32 %v5871_v46, %v3249_v28 }
 0x504   : > { %4516 = vrsqrt.f32 %v3182_v39  ;;  %v3247_v60 = vmul.f32 %v5858_v26, %v3224_v31  ;;  %v3269_v13 = vadd.f32 %v5871_v46, %v3246_v50 }
 0x505   : > { %v3282_v15 = vpack.c.bf16 %v3272_v40, %v3271_v3 }
 0x506   : > { %v3270_v9 = vadd.f32 %v5871_v46, %v3247_v60 }
 0x508   : > { %v3281_v63 = vpack.c.bf16 %v3270_v9, %v3269_v13 }
 0x50a   : > { %4198 = vmatprep.mubr.bf16.mxu0 %v3281_v63 }
 0x50b   : > { %v4511_v42 = vpop.eup %4510  ;;  %4199 = vmatmul.mubr.bf16.gmra.mxu0 %v3282_v15 }
 0x50c   : > { %v3227_v38 = vmul.f32 %v4511_v42, %v3211_v36 }
 0x50d   : > { %v4513_v10 = vpop.eup %4512 }
 0x50e   : > { %v3228_v51 = vmul.f32 %v4513_v10, %v3212_v16  ;;  %v3250_v49 = vmul.f32 %v5858_v26, %v3227_v38 }
 0x50f   : > { %v4515_v2 = vpop.eup %4514 }
 0x510   : > { %v3251_v30 = vmul.f32 %v5858_v26, %v3228_v51  ;;  %v3229_v45 = vmul.f32 %v4515_v2, %v3213_v5  ;;  %v3273_v41 = vadd.f32 %v5871_v46, %v3250_v49 }
 0x511   : > { %v4517_v14 = vpop.eup %4516 }
 0x512   : > { %v3274_v0 = vadd.f32 %v5871_v46, %v3251_v30  ;;  %v3230_v61 = vmul.f32 %v4517_v14, %v3214_v59  ;;  %v3252_v4 = vmul.f32 %v5858_v26, %v3229_v45 }
 0x514   : > { %v3283_v12 = vpack.c.bf16 %v3274_v0, %v3273_v41  ;;  %v3253_v56 = vmul.f32 %v5858_v26, %v3230_v61  ;;  %v3275_v19 = vadd.f32 %v5871_v46, %v3252_v4 }
 0x516   : > { %4202 = vmatprep.mubr.bf16.mxu0 %v3283_v12  ;;  %v3276_v55 = vadd.f32 %v5871_v46, %v3253_v56 }
 0x518   : > { %v3284_v35 = vpack.c.bf16 %v3276_v55, %v3275_v19 }
 0x51a   : > { %4203 = vmatmul.mubr.bf16.gmra.mxu0 %v3284_v35 }
 0x5ab   : > { %v4192_v22 = vpop.f32.mrf.mxu0 }
 0x5ac   : > { %v3399_v62 = vadd.f32 %v4192_v22, %v3833_v27 }
 0x5ad   : > { %v3390_v32 = vpop.f32.mrf.mxu0 }
 0x5ae   : > { %v3391_v23 = vadd.f32 %v3833_v27, %v3390_v32 }
 0x5af   : > { %v4193_v54 = vpop.f32.mrf.mxu0 }
 0x5b0   : > { %v3402_v37 = vadd.f32 %v4193_v54, %v3833_v27 }
 0x5b1   : > { %v3393_v26 = vpop.f32.mrf.mxu0 }
 0x5b2   : > { %v3892_v33 = vpack.c.bf16 %v3402_v37, %v3399_v62  ;;  %v3394_v52 = vadd.f32 %v3833_v27, %v3393_v26 }
 0x5b4   : > { %3924 = vst [vmem:[%s5959_s19 + $0x8] sm:$0xff] %v3892_v33   ;;  %v3887_v46 = vpack.c.bf16 %v3394_v52, %v3391_v23 }
 0x5b6   : > { %3888 = vst [vmem:[%s5959_s19] sm:$0xff] %v3887_v46  }
 0x5bc   : > { %v4196_v11 = vpop.f32.mrf.mxu0 }
 0x5bd   : > { %v3415_v8 = vadd.f32 %v4196_v11, %v3833_v27 }
 0x5be   : > { %v3406_v44 = vpop.f32.mrf.mxu0 }
 0x5bf   : > { %v3407_v29 = vadd.f32 %v3833_v27, %v3406_v44 }
 0x5c0   : > { %v4197_v6 = vpop.f32.mrf.mxu0 }
 0x5c1   : > { %v3418_v25 = vadd.f32 %v4197_v6, %v3833_v27 }
 0x5c2   : > { %v3409_v34 = vpop.f32.mrf.mxu0 }
 0x5c3   : > { %v3902_v24 = vpack.c.bf16 %v3418_v25, %v3415_v8  ;;  %v3410_v17 = vadd.f32 %v3833_v27, %v3409_v34 }
 0x5c5   : > { %3926 = vst [vmem:[%s5959_s19 + $0x18] sm:$0xff] %v3902_v24   ;;  %v3897_v21 = vpack.c.bf16 %v3410_v17, %v3407_v29 }
 0x5c7   : > { %3925 = vst [vmem:[%s5959_s19 + $0x10] sm:$0xff] %v3897_v21  }
 0x5cb   : > { %v4200_v7 = vpop.f32.mrf.mxu0 }
 0x5cc   : > { %v3431_v47 = vadd.f32 %v4200_v7, %v3833_v27 }
 0x5cd   : > { %v3422_v48 = vpop.f32.mrf.mxu0 }
 0x5ce   : > { %v3423_v53 = vadd.f32 %v3833_v27, %v3422_v48 }
 0x5cf   : > { %v4201_v18 = vpop.f32.mrf.mxu0 }
 0x5d0   : > { %v3434_v58 = vadd.f32 %v4201_v18, %v3833_v27 }
 0x5d1   : > { %v3425_v20 = vpop.f32.mrf.mxu0 }
 0x5d2   : > { %v3912_v1 = vpack.c.bf16 %v3434_v58, %v3431_v47  ;;  %v3426_v57 = vadd.f32 %v3833_v27, %v3425_v20 }
 0x5d4   : > { %3928 = vst [vmem:[%s5959_s19 + $0x28] sm:$0xff] %v3912_v1   ;;  %v3907_v28 = vpack.c.bf16 %v3426_v57, %v3423_v53 }
 0x5d6   : > { %3927 = vst [vmem:[%s5959_s19 + $0x20] sm:$0xff] %v3907_v28  }
 0x5da   : > { %v4204_v39 = vpop.f32.mrf.mxu0 }
 0x5db   : > { %v3447_v43 = vadd.f32 %v4204_v39, %v3833_v27 }
 0x5dc   : > { %v3438_v31 = vpop.f32.mrf.mxu0 }
 0x5dd   : > { %v3439_v13 = vadd.f32 %v3833_v27, %v3438_v31 }
 0x5de   : > { %v4205_v50 = vpop.f32.mrf.mxu0 }
 0x5df   : > { %v3450_v60 = vadd.f32 %v4205_v50, %v3833_v27 }
 0x5e0   : > { %v3441_v40 = vpop.f32.mrf.mxu0 }
 0x5e1   : > { %v3922_v9 = vpack.c.bf16 %v3450_v60, %v3447_v43  ;;  %v3442_v3 = vadd.f32 %v3833_v27, %v3441_v40 }
 0x5e3   : > { %3930 = vst [vmem:[%s5959_s19 + $0x38] sm:$0xff] %v3922_v9   ;;  %v3917_v63 = vpack.c.bf16 %v3442_v3, %v3439_v13 }
 0x5e5   : > { %3929 = vst [vmem:[%s5959_s19 + $0x30] sm:$0xff] %v3917_v63  }
 0x5e6   : > { %4531 = shalt.err (!%p4528_p5)
}
 0x5e7   : > { %s4532_s25 = scalar_lea.hbm %s5972_s27, 1024  ;;  %s4536_s30 = scalar_lea.hbm %s6041_s16, 2048 }
 0x5e8   : > { %p4533_p6 = scmp.ne.s32.totalorder %s5972_s27, %s4532_s25  ;;  %p4537_p10 = scmp.lt.s32.totalorder %s5972_s27, %s6041_s16 }
 0x5e9   : > { %p4538_p11 = scmp.lt.s32.totalorder %s4536_s30, %s4532_s25 }
 0x5ea   : > { %p4534_p7 = pnand %p4533_p6, %p4728_p4 }
 0x5eb   : > { %p4539_p12 = por %p4538_p11, %p4537_p10 }
 0x5ec   : > { %p4535_p9 = pneg %p4534_p7 }
 0x5ee   : > { %p4540_p13 = pnand %p4539_p12, %p4535_p9 }
 0x5f0   : > { %4543 = shalt.err (!%p4540_p13)
}
 0x5f1   : > { %s4601_s29 = smov 64   ;;  %s4602_s3 = smov 4  }
 0x5f2   : > { %4225 = dma.vmem_to_hbm [thread:$0]  (%p4728_p4), %s5974_s17, 1024, %s5972_s27, %s5980_s24, %s4601_s29, %s4601_s29, %s4602_s3  }
 0x5f3 PF: > { %p4231_p0 = scmp.ge.s32.totalorder %s4594_s26, 2  ;;  %s3564_s4 = sand.u32 1, %s4574_s21  }
 0x5f4   : > { %s3565_s25 = scalar_lea.sflag [#allocation3], %s3564_s4 }
 0x5f5   : > { %p4228_p1 = pnand %p4231_p0, %p4735_p8 }
 0x5f7   : > { %p4229_p2 = pneg %p4228_p1 }
 0x5f9   : > { %4569 = dma.done.wait (%p4229_p2), %s3565_s25, 1024  }
 0x5fa   : > { %4571 = vsyncadd (%p4229_p2), %s3565_s25, 4294966272  ;;  %s29_s26 = sadd.s32 1, %s4594_s26   ;;  %s6057_s19 = sld [smem:[#allocation7_spill]] }
 0x5fb   : > { %p26_p3 = scmp.ge.s32.totalorder %s29_s26, 4   ;;  %s6058_s24 = sld [smem:[#allocation5_spill]] }
 0x5fc   : > { %s6059_s25 = sld [smem:[#allocation6_spill]]  ;;  %s6060_s21 = smov %s4578_s22 }
 0x5fd   : > { %s6061_s22 = smov %s4582_s23  ;;  %28 = sbr.rel (!%p26_p3) target bundleno = 9 (0x9), region = 128 }
 0x600   : > { %s6062_s23 = smov %s6057_s19 }
 0x602   :  { %3570 = vsyncpa [#allocation3], 1 }
 0x603   :  { %3572 = vsyncpa [#allocation3 + $0x1], 1 }

</bundles_post_ra>
